<compile_context>
chip_gen: v7x
topology: tpu7x:2x2x1
jax: 0.10.0
libtpu: 0.0.40
codegen_flags: <defaults>
</compile_context>

<pallas_src>
import functools

import numpy as np
import jax
import jax.numpy as jnp
from jax.experimental import pallas as pl
from jax.experimental.pallas import tpu as pltpu


def _round_up(x, m):
    return (x + m - 1) // m * m


def _lyrics_kernel(idx_ref, emb_ref, w1_ref, b1_ref, w2_ref, b2_ref,
                   out_ref, slab_ref, *, context_size):
    # idx_ref : (B_pad*C,)       int32 SMEM (scalar prefetch, flattened)
    # emb_ref : (V, E)           f32   VMEM (whole table resident)
    # w1_ref  : (CE_pad, H_pad)  bf16  VMEM
    # b1_ref  : (1, H_pad)       f32
    # w2_ref  : (H_pad, V_pad)   bf16
    # b2_ref  : (1, V_pad)       f32   (-1e30 in padded vocab columns)
    # out_ref : (B_TILE, V_pad)  f32
    # slab_ref: (B_TILE, CE_pad) f32   VMEM scratch (flattened gathered embeds)
    B_TILE = out_ref.shape[0]
    V, E = emb_ref.shape
    C = context_size
    b0 = pl.program_id(0) * B_TILE

    # Zero the slab so the CE..CE_pad pad columns contribute nothing to the
    # matmul (scratch is uninitialized and per-core; real columns are
    # overwritten by the gather below).  One tiny vst per tile.
    slab_ref[...] = jnp.zeros_like(slab_ref)

    # ---- embedding gather (scalar ids -> dynamic VMEM row slices) ----------
    for r in range(B_TILE):
        for c in range(C):
            tok = idx_ref[(b0 + r) * C + c]
            tok = jnp.minimum(jnp.maximum(tok, 0), V - 1)   # no HW OOB check in VMEM
            slab_ref[pl.ds(r, 1), pl.ds(c * E, E)] = emb_ref[pl.ds(tok, 1), :]

    # ---- linear1 + ReLU: one (B_TILE, CE_pad) @ (CE_pad, H_pad) MXU pass ----
    slab = slab_ref[...].astype(w1_ref.dtype)                       # bf16 operands
    hidden = jnp.dot(slab, w1_ref[...], preferred_element_type=jnp.float32)
    hidden = jnp.maximum(hidden + b1_ref[...], 0.0)                 # f32 accum

    # ---- linear2 + log_softmax over the (padded) vocab axis -----------------
    logits = jnp.dot(hidden.astype(w2_ref.dtype), w2_ref[...],
                     preferred_element_type=jnp.float32) + b2_ref[...]
    m = jnp.max(logits, axis=-1, keepdims=True)
    shifted = logits - m
    lse = jnp.log(jnp.sum(jnp.exp(shifted), axis=-1, keepdims=True))
    out_ref[...] = shifted - lse


def lyrics_embeddings_forward(indices, emb_table, w1, b1, w2, b2,
                              *, mxu_dtype=jnp.bfloat16, b_tile=None):
    """indices: (B, C) int; emb_table: (V, E); w1: (H, C*E), b1: (H,),
    w2: (V, H), b2: (V,)  (PyTorch layouts). Returns (B, V) f32 log-probs."""
    B, C = indices.shape
    V, E = emb_table.shape
    H = b1.shape[0]
    CE = C * E

    # Lane-dense padding of every MXU dimension.
    H_pad = _round_up(H, 128)
    V_pad = _round_up(V, 128)
    CE_pad = _round_up(CE, 128)

    # Batch tiling: "parallel" grid axis. Cap the tile so the unrolled gather
    # loop stays small; larger batches just get more grid steps.
    if b_tile is None:
        b_tile = min(_round_up(B, 8), 32)
    B_pad = _round_up(B, b_tile)
    n_tiles = B_pad // b_tile

    # Glue: PyTorch (out,in) -> (in,out); zero-pad to lane-dense shapes.
    w1_p = jnp.zeros((CE_pad, H_pad), jnp.float32).at[:CE, :H].set(
        jnp.transpose(w1).astype(jnp.float32)).astype(mxu_dtype)
    b1_p = jnp.zeros((1, H_pad), jnp.float32).at[:, :H].set(
        b1.reshape(1, H).astype(jnp.float32))
    w2_p = jnp.zeros((H_pad, V_pad), jnp.float32).at[:H, :V].set(
        jnp.transpose(w2).astype(jnp.float32)).astype(mxu_dtype)
    # Padded vocab columns get a huge negative bias -> exp() underflows to 0,
    # so log_softmax over V_pad equals log_softmax over the real V columns.
    b2_p = jnp.full((1, V_pad), -1e30, jnp.float32).at[:, :V].set(
        b2.reshape(1, V).astype(jnp.float32))

    # Flattened 1-D id table: minimal SMEM padding (next_pow2(4N) bytes).
    idx_flat = jnp.zeros((B_pad * C,), jnp.int32).at[:B * C].set(
        indices.astype(jnp.int32).reshape(-1))
    emb_f32 = emb_table.astype(jnp.float32)   # f32 -> clean dynamic row slices

    kernel = functools.partial(_lyrics_kernel, context_size=C)

    out = pl.pallas_call(
        kernel,
        out_shape=jax.ShapeDtypeStruct((B_pad, V_pad), jnp.float32),
        grid_spec=pltpu.PrefetchScalarGridSpec(
            num_scalar_prefetch=1,                 # indices -> SMEM scalar path
            grid=(n_tiles,),
            in_specs=[
                pl.BlockSpec((V, E), lambda b, idx: (0, 0)),
                pl.BlockSpec((CE_pad, H_pad), lambda b, idx: (0, 0)),
                pl.BlockSpec((1, H_pad), lambda b, idx: (0, 0)),
                pl.BlockSpec((H_pad, V_pad), lambda b, idx: (0, 0)),
                pl.BlockSpec((1, V_pad), lambda b, idx: (0, 0)),
            ],
            out_specs=pl.BlockSpec((b_tile, V_pad), lambda b, idx: (b, 0)),
            scratch_shapes=[pltpu.VMEM((b_tile, CE_pad), jnp.float32)],
        ),
        compiler_params=pltpu.CompilerParams(
            dimension_semantics=("parallel",),
            vmem_limit_bytes=32 * 1024 * 1024,
        ),
    )(idx_flat, emb_f32, w1_p, b1_p, w2_p, b2_p)

    return out[:B, :V]


def _reference(indices, emb_table, w1, b1, w2, b2):
    flat = emb_table[indices].reshape(indices.shape[0], -1)
    h = jnp.maximum(flat @ w1.T + b1, 0.0)
    logits = h @ w2.T + b2
    return jax.nn.log_softmax(logits, axis=1)


if __name__ == "__main__":
    # Small shapes consistent with the module's forward.
    VOCAB = 64
    EMB = 16
    CONTEXT = 4
    HIDDEN = 32
    BATCH = 8

    key = jax.random.PRNGKey(0)
    k_idx, k_emb, k_w1, k_b1, k_w2, k_b2 = jax.random.split(key, 6)

    indices = jax.random.randint(k_idx, (BATCH, CONTEXT), 0, VOCAB, dtype=jnp.int32)
    emb_table = 0.1 * jax.random.normal(k_emb, (VOCAB, EMB), dtype=jnp.float32)
    w1 = 0.1 * jax.random.normal(k_w1, (HIDDEN, CONTEXT * EMB), dtype=jnp.float32)
    b1 = 0.1 * jax.random.normal(k_b1, (HIDDEN,), dtype=jnp.float32)
    w2 = 0.1 * jax.random.normal(k_w2, (VOCAB, HIDDEN), dtype=jnp.float32)
    b2 = 0.1 * jax.random.normal(k_b2, (VOCAB,), dtype=jnp.float32)

    out = lyrics_embeddings_forward(indices, emb_table, w1, b1, w2, b2)
    out = jax.block_until_ready(out)

    ref = _reference(indices, emb_table, w1, b1, w2, b2)
    assert out.shape == (BATCH, VOCAB)
    # bf16 MXU operands (f32 accumulation) -> slightly looser tolerance than f32.
    np.testing.assert_allclose(np.asarray(out), np.asarray(ref), rtol=5e-3, atol=5e-3)

    print("KERNEL_OK")
</pallas_src>

<mosaic_0001>
module attributes {stable_mosaic.version = 11 : i64} {
  func.func @_lyrics_kernel(%arg0: i32, %arg1: memref<32xi32, #tpu.memory_space<smem>>, %arg2: memref<64x16xf32, #tpu.memory_space<vmem>>, %arg3: memref<128x128xbf16, #tpu.memory_space<vmem>>, %arg4: memref<1x128xf32, #tpu.memory_space<vmem>>, %arg5: memref<128x128xbf16, #tpu.memory_space<vmem>>, %arg6: memref<1x128xf32, #tpu.memory_space<vmem>>, %arg7: memref<8x128xf32, #tpu.memory_space<vmem>>, %arg8: memref<8x128xf32, #tpu.memory_space<vmem>>) attributes {dimension_semantics = [#tpu.dimension_semantics<parallel>], iteration_bounds = array<i64: 1>, scalar_prefetch = 1 : i64, scratch_operands = 1 : i64, tpu.core_type = #tpu.core_type<tc>, window_params = [{pipeline_mode = #tpu.pipeline_mode<synchronous>, transform_indices = @transform_0, window_bounds = array<i64: 64, 16>}, {pipeline_mode = #tpu.pipeline_mode<synchronous>, transform_indices = @transform_1, window_bounds = array<i64: 128, 128>}, {pipeline_mode = #tpu.pipeline_mode<synchronous>, transform_indices = @transform_2, window_bounds = array<i64: 1, 128>}, {pipeline_mode = #tpu.pipeline_mode<synchronous>, transform_indices = @transform_3, window_bounds = array<i64: 128, 128>}, {pipeline_mode = #tpu.pipeline_mode<synchronous>, transform_indices = @transform_4, window_bounds = array<i64: 1, 128>}, {transform_indices = @transform_5, window_bounds = array<i64: 8, 128>}]} {
    %c8_i32 = arith.constant 8 : i32
    %0 = arith.muli %arg0, %c8_i32 : i32
    %cst = arith.constant 0.000000e+00 : f32
    %1 = vector.broadcast %cst : f32 to vector<8x128xf32>
    %c0 = arith.constant 0 : index
    %c0_0 = arith.constant 0 : index
    %2 = vector.load %arg8[%c0, %c0_0] : memref<8x128xf32, #tpu.memory_space<vmem>>, vector<8x128xf32>
    tpu.vector_store %arg8[%c0, %c0_0], %1 {strides = array<i32>} : memref<8x128xf32, #tpu.memory_space<vmem>>, vector<8x128xf32>,
    %c0_i32 = arith.constant 0 : i32
    %3 = arith.addi %0, %c0_i32 : i32
    %c4_i32 = arith.constant 4 : i32
    %4 = arith.muli %3, %c4_i32 : i32
    %c0_i32_1 = arith.constant 0 : i32
    %5 = arith.addi %4, %c0_i32_1 : i32
    %6 = arith.index_cast %5 : i32 to index
    %7 = memref.load %arg1[%6] : memref<32xi32, #tpu.memory_space<smem>>
    %c0_i32_2 = arith.constant 0 : i32
    %8 = arith.maxsi %7, %c0_i32_2 : i32
    %c63_i32 = arith.constant 63 : i32
    %9 = arith.minsi %8, %c63_i32 : i32
    %10 = arith.index_cast %9 : i32 to index
    %c0_3 = arith.constant 0 : index
    %11 = vector.load %arg2[%10, %c0_3] : memref<64x16xf32, #tpu.memory_space<vmem>>, vector<1x16xf32>
    %c0_4 = arith.constant 0 : index
    %c0_5 = arith.constant 0 : index
    %12 = vector.load %arg8[%c0_4, %c0_5] : memref<8x128xf32, #tpu.memory_space<vmem>>, vector<1x16xf32>
    tpu.vector_store %arg8[%c0_4, %c0_5], %11 {strides = array<i32>} : memref<8x128xf32, #tpu.memory_space<vmem>>, vector<1x16xf32>,
    %c0_i32_6 = arith.constant 0 : i32
    %13 = arith.addi %0, %c0_i32_6 : i32
    %c4_i32_7 = arith.constant 4 : i32
    %14 = arith.muli %13, %c4_i32_7 : i32
    %c1_i32 = arith.constant 1 : i32
    %15 = arith.addi %14, %c1_i32 : i32
    %16 = arith.index_cast %15 : i32 to index
    %17 = memref.load %arg1[%16] : memref<32xi32, #tpu.memory_space<smem>>
    %c0_i32_8 = arith.constant 0 : i32
    %18 = arith.maxsi %17, %c0_i32_8 : i32
    %c63_i32_9 = arith.constant 63 : i32
    %19 = arith.minsi %18, %c63_i32_9 : i32
    %20 = arith.index_cast %19 : i32 to index
    %c0_10 = arith.constant 0 : index
    %21 = vector.load %arg2[%20, %c0_10] : memref<64x16xf32, #tpu.memory_space<vmem>>, vector<1x16xf32>
    %c0_11 = arith.constant 0 : index
    %c16 = arith.constant 16 : index
    %22 = vector.load %arg8[%c0_11, %c16] : memref<8x128xf32, #tpu.memory_space<vmem>>, vector<1x16xf32>
    tpu.vector_store %arg8[%c0_11, %c16], %21 {strides = array<i32>} : memref<8x128xf32, #tpu.memory_space<vmem>>, vector<1x16xf32>,
    %c0_i32_12 = arith.constant 0 : i32
    %23 = arith.addi %0, %c0_i32_12 : i32
    %c4_i32_13 = arith.constant 4 : i32
    %24 = arith.muli %23, %c4_i32_13 : i32
    %c2_i32 = arith.constant 2 : i32
    %25 = arith.addi %24, %c2_i32 : i32
    %26 = arith.index_cast %25 : i32 to index
    %27 = memref.load %arg1[%26] : memref<32xi32, #tpu.memory_space<smem>>
    %c0_i32_14 = arith.constant 0 : i32
    %28 = arith.maxsi %27, %c0_i32_14 : i32
    %c63_i32_15 = arith.constant 63 : i32
    %29 = arith.minsi %28, %c63_i32_15 : i32
    %30 = arith.index_cast %29 : i32 to index
    %c0_16 = arith.constant 0 : index
    %31 = vector.load %arg2[%30, %c0_16] : memref<64x16xf32, #tpu.memory_space<vmem>>, vector<1x16xf32>
    %c0_17 = arith.constant 0 : index
    %c32 = arith.constant 32 : index
    %32 = vector.load %arg8[%c0_17, %c32] : memref<8x128xf32, #tpu.memory_space<vmem>>, vector<1x16xf32>
    tpu.vector_store %arg8[%c0_17, %c32], %31 {strides = array<i32>} : memref<8x128xf32, #tpu.memory_space<vmem>>, vector<1x16xf32>,
    %c0_i32_18 = arith.constant 0 : i32
    %33 = arith.addi %0, %c0_i32_18 : i32
    %c4_i32_19 = arith.constant 4 : i32
    %34 = arith.muli %33, %c4_i32_19 : i32
    %c3_i32 = arith.constant 3 : i32
    %35 = arith.addi %34, %c3_i32 : i32
    %36 = arith.index_cast %35 : i32 to index
    %37 = memref.load %arg1[%36] : memref<32xi32, #tpu.memory_space<smem>>
    %c0_i32_20 = arith.constant 0 : i32
    %38 = arith.maxsi %37, %c0_i32_20 : i32
    %c63_i32_21 = arith.constant 63 : i32
    %39 = arith.minsi %38, %c63_i32_21 : i32
    %40 = arith.index_cast %39 : i32 to index
    %c0_22 = arith.constant 0 : index
    %41 = vector.load %arg2[%40, %c0_22] : memref<64x16xf32, #tpu.memory_space<vmem>>, vector<1x16xf32>
    %c0_23 = arith.constant 0 : index
    %c48 = arith.constant 48 : index
    %42 = vector.load %arg8[%c0_23, %c48] : memref<8x128xf32, #tpu.memory_space<vmem>>, vector<1x16xf32>
    tpu.vector_store %arg8[%c0_23, %c48], %41 {strides = array<i32>} : memref<8x128xf32, #tpu.memory_space<vmem>>, vector<1x16xf32>,
    %c1_i32_24 = arith.constant 1 : i32
    %43 = arith.addi %0, %c1_i32_24 : i32
    %c4_i32_25 = arith.constant 4 : i32
    %44 = arith.muli %43, %c4_i32_25 : i32
    %c0_i32_26 = arith.constant 0 : i32
    %45 = arith.addi %44, %c0_i32_26 : i32
    %46 = arith.index_cast %45 : i32 to index
    %47 = memref.load %arg1[%46] : memref<32xi32, #tpu.memory_space<smem>>
    %c0_i32_27 = arith.constant 0 : i32
    %48 = arith.maxsi %47, %c0_i32_27 : i32
    %c63_i32_28 = arith.constant 63 : i32
    %49 = arith.minsi %48, %c63_i32_28 : i32
    %50 = arith.index_cast %49 : i32 to index
    %c0_29 = arith.constant 0 : index
    %51 = vector.load %arg2[%50, %c0_29] : memref<64x16xf32, #tpu.memory_space<vmem>>, vector<1x16xf32>
    %c1 = arith.constant 1 : index
    %c0_30 = arith.constant 0 : index
    %52 = vector.load %arg8[%c1, %c0_30] : memref<8x128xf32, #tpu.memory_space<vmem>>, vector<1x16xf32>
    tpu.vector_store %arg8[%c1, %c0_30], %51 {strides = array<i32>} : memref<8x128xf32, #tpu.memory_space<vmem>>, vector<1x16xf32>,
    %c1_i32_31 = arith.constant 1 : i32
    %53 = arith.addi %0, %c1_i32_31 : i32
    %c4_i32_32 = arith.constant 4 : i32
    %54 = arith.muli %53, %c4_i32_32 : i32
    %c1_i32_33 = arith.constant 1 : i32
    %55 = arith.addi %54, %c1_i32_33 : i32
    %56 = arith.index_cast %55 : i32 to index
    %57 = memref.load %arg1[%56] : memref<32xi32, #tpu.memory_space<smem>>
    %c0_i32_34 = arith.constant 0 : i32
    %58 = arith.maxsi %57, %c0_i32_34 : i32
    %c63_i32_35 = arith.constant 63 : i32
    %59 = arith.minsi %58, %c63_i32_35 : i32
    %60 = arith.index_cast %59 : i32 to index
    %c0_36 = arith.constant 0 : index
    %61 = vector.load %arg2[%60, %c0_36] : memref<64x16xf32, #tpu.memory_space<vmem>>, vector<1x16xf32>
    %c1_37 = arith.constant 1 : index
    %c16_38 = arith.constant 16 : index
    %62 = vector.load %arg8[%c1_37, %c16_38] : memref<8x128xf32, #tpu.memory_space<vmem>>, vector<1x16xf32>
    tpu.vector_store %arg8[%c1_37, %c16_38], %61 {strides = array<i32>} : memref<8x128xf32, #tpu.memory_space<vmem>>, vector<1x16xf32>,
    %c1_i32_39 = arith.constant 1 : i32
    %63 = arith.addi %0, %c1_i32_39 : i32
    %c4_i32_40 = arith.constant 4 : i32
    %64 = arith.muli %63, %c4_i32_40 : i32
    %c2_i32_41 = arith.constant 2 : i32
    %65 = arith.addi %64, %c2_i32_41 : i32
    %66 = arith.index_cast %65 : i32 to index
    %67 = memref.load %arg1[%66] : memref<32xi32, #tpu.memory_space<smem>>
    %c0_i32_42 = arith.constant 0 : i32
    %68 = arith.maxsi %67, %c0_i32_42 : i32
    %c63_i32_43 = arith.constant 63 : i32
    %69 = arith.minsi %68, %c63_i32_43 : i32
    %70 = arith.index_cast %69 : i32 to index
    %c0_44 = arith.constant 0 : index
    %71 = vector.load %arg2[%70, %c0_44] : memref<64x16xf32, #tpu.memory_space<vmem>>, vector<1x16xf32>
    %c1_45 = arith.constant 1 : index
    %c32_46 = arith.constant 32 : index
    %72 = vector.load %arg8[%c1_45, %c32_46] : memref<8x128xf32, #tpu.memory_space<vmem>>, vector<1x16xf32>
    tpu.vector_store %arg8[%c1_45, %c32_46], %71 {strides = array<i32>} : memref<8x128xf32, #tpu.memory_space<vmem>>, vector<1x16xf32>,
    %c1_i32_47 = arith.constant 1 : i32
    %73 = arith.addi %0, %c1_i32_47 : i32
    %c4_i32_48 = arith.constant 4 : i32
    %74 = arith.muli %73, %c4_i32_48 : i32
    %c3_i32_49 = arith.constant 3 : i32
    %75 = arith.addi %74, %c3_i32_49 : i32
    %76 = arith.index_cast %75 : i32 to index
    %77 = memref.load %arg1[%76] : memref<32xi32, #tpu.memory_space<smem>>
    %c0_i32_50 = arith.constant 0 : i32
    %78 = arith.maxsi %77, %c0_i32_50 : i32
    %c63_i32_51 = arith.constant 63 : i32
    %79 = arith.minsi %78, %c63_i32_51 : i32
    %80 = arith.index_cast %79 : i32 to index
    %c0_52 = arith.constant 0 : index
    %81 = vector.load %arg2[%80, %c0_52] : memref<64x16xf32, #tpu.memory_space<vmem>>, vector<1x16xf32>
    %c1_53 = arith.constant 1 : index
    %c48_54 = arith.constant 48 : index
    %82 = vector.load %arg8[%c1_53, %c48_54] : memref<8x128xf32, #tpu.memory_space<vmem>>, vector<1x16xf32>
    tpu.vector_store %arg8[%c1_53, %c48_54], %81 {strides = array<i32>} : memref<8x128xf32, #tpu.memory_space<vmem>>, vector<1x16xf32>,
    %c2_i32_55 = arith.constant 2 : i32
    %83 = arith.addi %0, %c2_i32_55 : i32
    %c4_i32_56 = arith.constant 4 : i32
    %84 = arith.muli %83, %c4_i32_56 : i32
    %c0_i32_57 = arith.constant 0 : i32
    %85 = arith.addi %84, %c0_i32_57 : i32
    %86 = arith.index_cast %85 : i32 to index
    %87 = memref.load %arg1[%86] : memref<32xi32, #tpu.memory_space<smem>>
    %c0_i32_58 = arith.constant 0 : i32
    %88 = arith.maxsi %87, %c0_i32_58 : i32
    %c63_i32_59 = arith.constant 63 : i32
    %89 = arith.minsi %88, %c63_i32_59 : i32
    %90 = arith.index_cast %89 : i32 to index
    %c0_60 = arith.constant 0 : index
    %91 = vector.load %arg2[%90, %c0_60] : memref<64x16xf32, #tpu.memory_space<vmem>>, vector<1x16xf32>
    %c2 = arith.constant 2 : index
    %c0_61 = arith.constant 0 : index
    %92 = vector.load %arg8[%c2, %c0_61] : memref<8x128xf32, #tpu.memory_space<vmem>>, vector<1x16xf32>
    tpu.vector_store %arg8[%c2, %c0_61], %91 {strides = array<i32>} : memref<8x128xf32, #tpu.memory_space<vmem>>, vector<1x16xf32>,
    %c2_i32_62 = arith.constant 2 : i32
    %93 = arith.addi %0, %c2_i32_62 : i32
    %c4_i32_63 = arith.constant 4 : i32
    %94 = arith.muli %93, %c4_i32_63 : i32
    %c1_i32_64 = arith.constant 1 : i32
    %95 = arith.addi %94, %c1_i32_64 : i32
    %96 = arith.index_cast %95 : i32 to index
    %97 = memref.load %arg1[%96] : memref<32xi32, #tpu.memory_space<smem>>
    %c0_i32_65 = arith.constant 0 : i32
    %98 = arith.maxsi %97, %c0_i32_65 : i32
    %c63_i32_66 = arith.constant 63 : i32
    %99 = arith.minsi %98, %c63_i32_66 : i32
    %100 = arith.index_cast %99 : i32 to index
    %c0_67 = arith.constant 0 : index
    %101 = vector.load %arg2[%100, %c0_67] : memref<64x16xf32, #tpu.memory_space<vmem>>, vector<1x16xf32>
    %c2_68 = arith.constant 2 : index
    %c16_69 = arith.constant 16 : index
    %102 = vector.load %arg8[%c2_68, %c16_69] : memref<8x128xf32, #tpu.memory_space<vmem>>, vector<1x16xf32>
    tpu.vector_store %arg8[%c2_68, %c16_69], %101 {strides = array<i32>} : memref<8x128xf32, #tpu.memory_space<vmem>>, vector<1x16xf32>,
    %c2_i32_70 = arith.constant 2 : i32
    %103 = arith.addi %0, %c2_i32_70 : i32
    %c4_i32_71 = arith.constant 4 : i32
    %104 = arith.muli %103, %c4_i32_71 : i32
    %c2_i32_72 = arith.constant 2 : i32
    %105 = arith.addi %104, %c2_i32_72 : i32
    %106 = arith.index_cast %105 : i32 to index
    %107 = memref.load %arg1[%106] : memref<32xi32, #tpu.memory_space<smem>>
    %c0_i32_73 = arith.constant 0 : i32
    %108 = arith.maxsi %107, %c0_i32_73 : i32
    %c63_i32_74 = arith.constant 63 : i32
    %109 = arith.minsi %108, %c63_i32_74 : i32
    %110 = arith.index_cast %109 : i32 to index
    %c0_75 = arith.constant 0 : index
    %111 = vector.load %arg2[%110, %c0_75] : memref<64x16xf32, #tpu.memory_space<vmem>>, vector<1x16xf32>
    %c2_76 = arith.constant 2 : index
    %c32_77 = arith.constant 32 : index
    %112 = vector.load %arg8[%c2_76, %c32_77] : memref<8x128xf32, #tpu.memory_space<vmem>>, vector<1x16xf32>
    tpu.vector_store %arg8[%c2_76, %c32_77], %111 {strides = array<i32>} : memref<8x128xf32, #tpu.memory_space<vmem>>, vector<1x16xf32>,
    %c2_i32_78 = arith.constant 2 : i32
    %113 = arith.addi %0, %c2_i32_78 : i32
    %c4_i32_79 = arith.constant 4 : i32
    %114 = arith.muli %113, %c4_i32_79 : i32
    %c3_i32_80 = arith.constant 3 : i32
    %115 = arith.addi %114, %c3_i32_80 : i32
    %116 = arith.index_cast %115 : i32 to index
    %117 = memref.load %arg1[%116] : memref<32xi32, #tpu.memory_space<smem>>
    %c0_i32_81 = arith.constant 0 : i32
    %118 = arith.maxsi %117, %c0_i32_81 : i32
    %c63_i32_82 = arith.constant 63 : i32
    %119 = arith.minsi %118, %c63_i32_82 : i32
    %120 = arith.index_cast %119 : i32 to index
    %c0_83 = arith.constant 0 : index
    %121 = vector.load %arg2[%120, %c0_83] : memref<64x16xf32, #tpu.memory_space<vmem>>, vector<1x16xf32>
    %c2_84 = arith.constant 2 : index
    %c48_85 = arith.constant 48 : index
    %122 = vector.load %arg8[%c2_84, %c48_85] : memref<8x128xf32, #tpu.memory_space<vmem>>, vector<1x16xf32>
    tpu.vector_store %arg8[%c2_84, %c48_85], %121 {strides = array<i32>} : memref<8x128xf32, #tpu.memory_space<vmem>>, vector<1x16xf32>,
    %c3_i32_86 = arith.constant 3 : i32
    %123 = arith.addi %0, %c3_i32_86 : i32
    %c4_i32_87 = arith.constant 4 : i32
    %124 = arith.muli %123, %c4_i32_87 : i32
    %c0_i32_88 = arith.constant 0 : i32
    %125 = arith.addi %124, %c0_i32_88 : i32
    %126 = arith.index_cast %125 : i32 to index
    %127 = memref.load %arg1[%126] : memref<32xi32, #tpu.memory_space<smem>>
    %c0_i32_89 = arith.constant 0 : i32
    %128 = arith.maxsi %127, %c0_i32_89 : i32
    %c63_i32_90 = arith.constant 63 : i32
    %129 = arith.minsi %128, %c63_i32_90 : i32
    %130 = arith.index_cast %129 : i32 to index
    %c0_91 = arith.constant 0 : index
    %131 = vector.load %arg2[%130, %c0_91] : memref<64x16xf32, #tpu.memory_space<vmem>>, vector<1x16xf32>
    %c3 = arith.constant 3 : index
    %c0_92 = arith.constant 0 : index
    %132 = vector.load %arg8[%c3, %c0_92] : memref<8x128xf32, #tpu.memory_space<vmem>>, vector<1x16xf32>
    tpu.vector_store %arg8[%c3, %c0_92], %131 {strides = array<i32>} : memref<8x128xf32, #tpu.memory_space<vmem>>, vector<1x16xf32>,
    %c3_i32_93 = arith.constant 3 : i32
    %133 = arith.addi %0, %c3_i32_93 : i32
    %c4_i32_94 = arith.constant 4 : i32
    %134 = arith.muli %133, %c4_i32_94 : i32
    %c1_i32_95 = arith.constant 1 : i32
    %135 = arith.addi %134, %c1_i32_95 : i32
    %136 = arith.index_cast %135 : i32 to index
    %137 = memref.load %arg1[%136] : memref<32xi32, #tpu.memory_space<smem>>
    %c0_i32_96 = arith.constant 0 : i32
    %138 = arith.maxsi %137, %c0_i32_96 : i32
    %c63_i32_97 = arith.constant 63 : i32
    %139 = arith.minsi %138, %c63_i32_97 : i32
    %140 = arith.index_cast %139 : i32 to index
    %c0_98 = arith.constant 0 : index
    %141 = vector.load %arg2[%140, %c0_98] : memref<64x16xf32, #tpu.memory_space<vmem>>, vector<1x16xf32>
    %c3_99 = arith.constant 3 : index
    %c16_100 = arith.constant 16 : index
    %142 = vector.load %arg8[%c3_99, %c16_100] : memref<8x128xf32, #tpu.memory_space<vmem>>, vector<1x16xf32>
    tpu.vector_store %arg8[%c3_99, %c16_100], %141 {strides = array<i32>} : memref<8x128xf32, #tpu.memory_space<vmem>>, vector<1x16xf32>,
    %c3_i32_101 = arith.constant 3 : i32
    %143 = arith.addi %0, %c3_i32_101 : i32
    %c4_i32_102 = arith.constant 4 : i32
    %144 = arith.muli %143, %c4_i32_102 : i32
    %c2_i32_103 = arith.constant 2 : i32
    %145 = arith.addi %144, %c2_i32_103 : i32
    %146 = arith.index_cast %145 : i32 to index
    %147 = memref.load %arg1[%146] : memref<32xi32, #tpu.memory_space<smem>>
    %c0_i32_104 = arith.constant 0 : i32
    %148 = arith.maxsi %147, %c0_i32_104 : i32
    %c63_i32_105 = arith.constant 63 : i32
    %149 = arith.minsi %148, %c63_i32_105 : i32
    %150 = arith.index_cast %149 : i32 to index
    %c0_106 = arith.constant 0 : index
    %151 = vector.load %arg2[%150, %c0_106] : memref<64x16xf32, #tpu.memory_space<vmem>>, vector<1x16xf32>
    %c3_107 = arith.constant 3 : index
    %c32_108 = arith.constant 32 : index
    %152 = vector.load %arg8[%c3_107, %c32_108] : memref<8x128xf32, #tpu.memory_space<vmem>>, vector<1x16xf32>
    tpu.vector_store %arg8[%c3_107, %c32_108], %151 {strides = array<i32>} : memref<8x128xf32, #tpu.memory_space<vmem>>, vector<1x16xf32>,
    %c3_i32_109 = arith.constant 3 : i32
    %153 = arith.addi %0, %c3_i32_109 : i32
    %c4_i32_110 = arith.constant 4 : i32
    %154 = arith.muli %153, %c4_i32_110 : i32
    %c3_i32_111 = arith.constant 3 : i32
    %155 = arith.addi %154, %c3_i32_111 : i32
    %156 = arith.index_cast %155 : i32 to index
    %157 = memref.load %arg1[%156] : memref<32xi32, #tpu.memory_space<smem>>
    %c0_i32_112 = arith.constant 0 : i32
    %158 = arith.maxsi %157, %c0_i32_112 : i32
    %c63_i32_113 = arith.constant 63 : i32
    %159 = arith.minsi %158, %c63_i32_113 : i32
    %160 = arith.index_cast %159 : i32 to index
    %c0_114 = arith.constant 0 : index
    %161 = vector.load %arg2[%160, %c0_114] : memref<64x16xf32, #tpu.memory_space<vmem>>, vector<1x16xf32>
    %c3_115 = arith.constant 3 : index
    %c48_116 = arith.constant 48 : index
    %162 = vector.load %arg8[%c3_115, %c48_116] : memref<8x128xf32, #tpu.memory_space<vmem>>, vector<1x16xf32>
    tpu.vector_store %arg8[%c3_115, %c48_116], %161 {strides = array<i32>} : memref<8x128xf32, #tpu.memory_space<vmem>>, vector<1x16xf32>,
    %c4_i32_117 = arith.constant 4 : i32
    %163 = arith.addi %0, %c4_i32_117 : i32
    %c4_i32_118 = arith.constant 4 : i32
    %164 = arith.muli %163, %c4_i32_118 : i32
    %c0_i32_119 = arith.constant 0 : i32
    %165 = arith.addi %164, %c0_i32_119 : i32
    %166 = arith.index_cast %165 : i32 to index
    %167 = memref.load %arg1[%166] : memref<32xi32, #tpu.memory_space<smem>>
    %c0_i32_120 = arith.constant 0 : i32
    %168 = arith.maxsi %167, %c0_i32_120 : i32
    %c63_i32_121 = arith.constant 63 : i32
    %169 = arith.minsi %168, %c63_i32_121 : i32
    %170 = arith.index_cast %169 : i32 to index
    %c0_122 = arith.constant 0 : index
    %171 = vector.load %arg2[%170, %c0_122] : memref<64x16xf32, #tpu.memory_space<vmem>>, vector<1x16xf32>
    %c4 = arith.constant 4 : index
    %c0_123 = arith.constant 0 : index
    %172 = vector.load %arg8[%c4, %c0_123] : memref<8x128xf32, #tpu.memory_space<vmem>>, vector<1x16xf32>
    tpu.vector_store %arg8[%c4, %c0_123], %171 {strides = array<i32>} : memref<8x128xf32, #tpu.memory_space<vmem>>, vector<1x16xf32>,
    %c4_i32_124 = arith.constant 4 : i32
    %173 = arith.addi %0, %c4_i32_124 : i32
    %c4_i32_125 = arith.constant 4 : i32
    %174 = arith.muli %173, %c4_i32_125 : i32
    %c1_i32_126 = arith.constant 1 : i32
    %175 = arith.addi %174, %c1_i32_126 : i32
    %176 = arith.index_cast %175 : i32 to index
    %177 = memref.load %arg1[%176] : memref<32xi32, #tpu.memory_space<smem>>
    %c0_i32_127 = arith.constant 0 : i32
    %178 = arith.maxsi %177, %c0_i32_127 : i32
    %c63_i32_128 = arith.constant 63 : i32
    %179 = arith.minsi %178, %c63_i32_128 : i32
    %180 = arith.index_cast %179 : i32 to index
    %c0_129 = arith.constant 0 : index
    %181 = vector.load %arg2[%180, %c0_129] : memref<64x16xf32, #tpu.memory_space<vmem>>, vector<1x16xf32>
    %c4_130 = arith.constant 4 : index
    %c16_131 = arith.constant 16 : index
    %182 = vector.load %arg8[%c4_130, %c16_131] : memref<8x128xf32, #tpu.memory_space<vmem>>, vector<1x16xf32>
    tpu.vector_store %arg8[%c4_130, %c16_131], %181 {strides = array<i32>} : memref<8x128xf32, #tpu.memory_space<vmem>>, vector<1x16xf32>,
    %c4_i32_132 = arith.constant 4 : i32
    %183 = arith.addi %0, %c4_i32_132 : i32
    %c4_i32_133 = arith.constant 4 : i32
    %184 = arith.muli %183, %c4_i32_133 : i32
    %c2_i32_134 = arith.constant 2 : i32
    %185 = arith.addi %184, %c2_i32_134 : i32
    %186 = arith.index_cast %185 : i32 to index
    %187 = memref.load %arg1[%186] : memref<32xi32, #tpu.memory_space<smem>>
    %c0_i32_135 = arith.constant 0 : i32
    %188 = arith.maxsi %187, %c0_i32_135 : i32
    %c63_i32_136 = arith.constant 63 : i32
    %189 = arith.minsi %188, %c63_i32_136 : i32
    %190 = arith.index_cast %189 : i32 to index
    %c0_137 = arith.constant 0 : index
    %191 = vector.load %arg2[%190, %c0_137] : memref<64x16xf32, #tpu.memory_space<vmem>>, vector<1x16xf32>
    %c4_138 = arith.constant 4 : index
    %c32_139 = arith.constant 32 : index
    %192 = vector.load %arg8[%c4_138, %c32_139] : memref<8x128xf32, #tpu.memory_space<vmem>>, vector<1x16xf32>
    tpu.vector_store %arg8[%c4_138, %c32_139], %191 {strides = array<i32>} : memref<8x128xf32, #tpu.memory_space<vmem>>, vector<1x16xf32>,
    %c4_i32_140 = arith.constant 4 : i32
    %193 = arith.addi %0, %c4_i32_140 : i32
    %c4_i32_141 = arith.constant 4 : i32
    %194 = arith.muli %193, %c4_i32_141 : i32
    %c3_i32_142 = arith.constant 3 : i32
    %195 = arith.addi %194, %c3_i32_142 : i32
    %196 = arith.index_cast %195 : i32 to index
    %197 = memref.load %arg1[%196] : memref<32xi32, #tpu.memory_space<smem>>
    %c0_i32_143 = arith.constant 0 : i32
    %198 = arith.maxsi %197, %c0_i32_143 : i32
    %c63_i32_144 = arith.constant 63 : i32
    %199 = arith.minsi %198, %c63_i32_144 : i32
    %200 = arith.index_cast %199 : i32 to index
    %c0_145 = arith.constant 0 : index
    %201 = vector.load %arg2[%200, %c0_145] : memref<64x16xf32, #tpu.memory_space<vmem>>, vector<1x16xf32>
    %c4_146 = arith.constant 4 : index
    %c48_147 = arith.constant 48 : index
    %202 = vector.load %arg8[%c4_146, %c48_147] : memref<8x128xf32, #tpu.memory_space<vmem>>, vector<1x16xf32>
    tpu.vector_store %arg8[%c4_146, %c48_147], %201 {strides = array<i32>} : memref<8x128xf32, #tpu.memory_space<vmem>>, vector<1x16xf32>,
    %c5_i32 = arith.constant 5 : i32
    %203 = arith.addi %0, %c5_i32 : i32
    %c4_i32_148 = arith.constant 4 : i32
    %204 = arith.muli %203, %c4_i32_148 : i32
    %c0_i32_149 = arith.constant 0 : i32
    %205 = arith.addi %204, %c0_i32_149 : i32
    %206 = arith.index_cast %205 : i32 to index
    %207 = memref.load %arg1[%206] : memref<32xi32, #tpu.memory_space<smem>>
    %c0_i32_150 = arith.constant 0 : i32
    %208 = arith.maxsi %207, %c0_i32_150 : i32
    %c63_i32_151 = arith.constant 63 : i32
    %209 = arith.minsi %208, %c63_i32_151 : i32
    %210 = arith.index_cast %209 : i32 to index
    %c0_152 = arith.constant 0 : index
    %211 = vector.load %arg2[%210, %c0_152] : memref<64x16xf32, #tpu.memory_space<vmem>>, vector<1x16xf32>
    %c5 = arith.constant 5 : index
    %c0_153 = arith.constant 0 : index
    %212 = vector.load %arg8[%c5, %c0_153] : memref<8x128xf32, #tpu.memory_space<vmem>>, vector<1x16xf32>
    tpu.vector_store %arg8[%c5, %c0_153], %211 {strides = array<i32>} : memref<8x128xf32, #tpu.memory_space<vmem>>, vector<1x16xf32>,
    %c5_i32_154 = arith.constant 5 : i32
    %213 = arith.addi %0, %c5_i32_154 : i32
    %c4_i32_155 = arith.constant 4 : i32
    %214 = arith.muli %213, %c4_i32_155 : i32
    %c1_i32_156 = arith.constant 1 : i32
    %215 = arith.addi %214, %c1_i32_156 : i32
    %216 = arith.index_cast %215 : i32 to index
    %217 = memref.load %arg1[%216] : memref<32xi32, #tpu.memory_space<smem>>
    %c0_i32_157 = arith.constant 0 : i32
    %218 = arith.maxsi %217, %c0_i32_157 : i32
    %c63_i32_158 = arith.constant 63 : i32
    %219 = arith.minsi %218, %c63_i32_158 : i32
    %220 = arith.index_cast %219 : i32 to index
    %c0_159 = arith.constant 0 : index
    %221 = vector.load %arg2[%220, %c0_159] : memref<64x16xf32, #tpu.memory_space<vmem>>, vector<1x16xf32>
    %c5_160 = arith.constant 5 : index
    %c16_161 = arith.constant 16 : index
    %222 = vector.load %arg8[%c5_160, %c16_161] : memref<8x128xf32, #tpu.memory_space<vmem>>, vector<1x16xf32>
    tpu.vector_store %arg8[%c5_160, %c16_161], %221 {strides = array<i32>} : memref<8x128xf32, #tpu.memory_space<vmem>>, vector<1x16xf32>,
    %c5_i32_162 = arith.constant 5 : i32
    %223 = arith.addi %0, %c5_i32_162 : i32
    %c4_i32_163 = arith.constant 4 : i32
    %224 = arith.muli %223, %c4_i32_163 : i32
    %c2_i32_164 = arith.constant 2 : i32
    %225 = arith.addi %224, %c2_i32_164 : i32
    %226 = arith.index_cast %225 : i32 to index
    %227 = memref.load %arg1[%226] : memref<32xi32, #tpu.memory_space<smem>>
    %c0_i32_165 = arith.constant 0 : i32
    %228 = arith.maxsi %227, %c0_i32_165 : i32
    %c63_i32_166 = arith.constant 63 : i32
    %229 = arith.minsi %228, %c63_i32_166 : i32
    %230 = arith.index_cast %229 : i32 to index
    %c0_167 = arith.constant 0 : index
    %231 = vector.load %arg2[%230, %c0_167] : memref<64x16xf32, #tpu.memory_space<vmem>>, vector<1x16xf32>
    %c5_168 = arith.constant 5 : index
    %c32_169 = arith.constant 32 : index
    %232 = vector.load %arg8[%c5_168, %c32_169] : memref<8x128xf32, #tpu.memory_space<vmem>>, vector<1x16xf32>
    tpu.vector_store %arg8[%c5_168, %c32_169], %231 {strides = array<i32>} : memref<8x128xf32, #tpu.memory_space<vmem>>, vector<1x16xf32>,
    %c5_i32_170 = arith.constant 5 : i32
    %233 = arith.addi %0, %c5_i32_170 : i32
    %c4_i32_171 = arith.constant 4 : i32
    %234 = arith.muli %233, %c4_i32_171 : i32
    %c3_i32_172 = arith.constant 3 : i32
    %235 = arith.addi %234, %c3_i32_172 : i32
    %236 = arith.index_cast %235 : i32 to index
    %237 = memref.load %arg1[%236] : memref<32xi32, #tpu.memory_space<smem>>
    %c0_i32_173 = arith.constant 0 : i32
    %238 = arith.maxsi %237, %c0_i32_173 : i32
    %c63_i32_174 = arith.constant 63 : i32
    %239 = arith.minsi %238, %c63_i32_174 : i32
    %240 = arith.index_cast %239 : i32 to index
    %c0_175 = arith.constant 0 : index
    %241 = vector.load %arg2[%240, %c0_175] : memref<64x16xf32, #tpu.memory_space<vmem>>, vector<1x16xf32>
    %c5_176 = arith.constant 5 : index
    %c48_177 = arith.constant 48 : index
    %242 = vector.load %arg8[%c5_176, %c48_177] : memref<8x128xf32, #tpu.memory_space<vmem>>, vector<1x16xf32>
    tpu.vector_store %arg8[%c5_176, %c48_177], %241 {strides = array<i32>} : memref<8x128xf32, #tpu.memory_space<vmem>>, vector<1x16xf32>,
    %c6_i32 = arith.constant 6 : i32
    %243 = arith.addi %0, %c6_i32 : i32
    %c4_i32_178 = arith.constant 4 : i32
    %244 = arith.muli %243, %c4_i32_178 : i32
    %c0_i32_179 = arith.constant 0 : i32
    %245 = arith.addi %244, %c0_i32_179 : i32
    %246 = arith.index_cast %245 : i32 to index
    %247 = memref.load %arg1[%246] : memref<32xi32, #tpu.memory_space<smem>>
    %c0_i32_180 = arith.constant 0 : i32
    %248 = arith.maxsi %247, %c0_i32_180 : i32
    %c63_i32_181 = arith.constant 63 : i32
    %249 = arith.minsi %248, %c63_i32_181 : i32
    %250 = arith.index_cast %249 : i32 to index
    %c0_182 = arith.constant 0 : index
    %251 = vector.load %arg2[%250, %c0_182] : memref<64x16xf32, #tpu.memory_space<vmem>>, vector<1x16xf32>
    %c6 = arith.constant 6 : index
    %c0_183 = arith.constant 0 : index
    %252 = vector.load %arg8[%c6, %c0_183] : memref<8x128xf32, #tpu.memory_space<vmem>>, vector<1x16xf32>
    tpu.vector_store %arg8[%c6, %c0_183], %251 {strides = array<i32>} : memref<8x128xf32, #tpu.memory_space<vmem>>, vector<1x16xf32>,
    %c6_i32_184 = arith.constant 6 : i32
    %253 = arith.addi %0, %c6_i32_184 : i32
    %c4_i32_185 = arith.constant 4 : i32
    %254 = arith.muli %253, %c4_i32_185 : i32
    %c1_i32_186 = arith.constant 1 : i32
    %255 = arith.addi %254, %c1_i32_186 : i32
    %256 = arith.index_cast %255 : i32 to index
    %257 = memref.load %arg1[%256] : memref<32xi32, #tpu.memory_space<smem>>
    %c0_i32_187 = arith.constant 0 : i32
    %258 = arith.maxsi %257, %c0_i32_187 : i32
    %c63_i32_188 = arith.constant 63 : i32
    %259 = arith.minsi %258, %c63_i32_188 : i32
    %260 = arith.index_cast %259 : i32 to index
    %c0_189 = arith.constant 0 : index
    %261 = vector.load %arg2[%260, %c0_189] : memref<64x16xf32, #tpu.memory_space<vmem>>, vector<1x16xf32>
    %c6_190 = arith.constant 6 : index
    %c16_191 = arith.constant 16 : index
    %262 = vector.load %arg8[%c6_190, %c16_191] : memref<8x128xf32, #tpu.memory_space<vmem>>, vector<1x16xf32>
    tpu.vector_store %arg8[%c6_190, %c16_191], %261 {strides = array<i32>} : memref<8x128xf32, #tpu.memory_space<vmem>>, vector<1x16xf32>,
    %c6_i32_192 = arith.constant 6 : i32
    %263 = arith.addi %0, %c6_i32_192 : i32
    %c4_i32_193 = arith.constant 4 : i32
    %264 = arith.muli %263, %c4_i32_193 : i32
    %c2_i32_194 = arith.constant 2 : i32
    %265 = arith.addi %264, %c2_i32_194 : i32
    %266 = arith.index_cast %265 : i32 to index
    %267 = memref.load %arg1[%266] : memref<32xi32, #tpu.memory_space<smem>>
    %c0_i32_195 = arith.constant 0 : i32
    %268 = arith.maxsi %267, %c0_i32_195 : i32
    %c63_i32_196 = arith.constant 63 : i32
    %269 = arith.minsi %268, %c63_i32_196 : i32
    %270 = arith.index_cast %269 : i32 to index
    %c0_197 = arith.constant 0 : index
    %271 = vector.load %arg2[%270, %c0_197] : memref<64x16xf32, #tpu.memory_space<vmem>>, vector<1x16xf32>
    %c6_198 = arith.constant 6 : index
    %c32_199 = arith.constant 32 : index
    %272 = vector.load %arg8[%c6_198, %c32_199] : memref<8x128xf32, #tpu.memory_space<vmem>>, vector<1x16xf32>
    tpu.vector_store %arg8[%c6_198, %c32_199], %271 {strides = array<i32>} : memref<8x128xf32, #tpu.memory_space<vmem>>, vector<1x16xf32>,
    %c6_i32_200 = arith.constant 6 : i32
    %273 = arith.addi %0, %c6_i32_200 : i32
    %c4_i32_201 = arith.constant 4 : i32
    %274 = arith.muli %273, %c4_i32_201 : i32
    %c3_i32_202 = arith.constant 3 : i32
    %275 = arith.addi %274, %c3_i32_202 : i32
    %276 = arith.index_cast %275 : i32 to index
    %277 = memref.load %arg1[%276] : memref<32xi32, #tpu.memory_space<smem>>
    %c0_i32_203 = arith.constant 0 : i32
    %278 = arith.maxsi %277, %c0_i32_203 : i32
    %c63_i32_204 = arith.constant 63 : i32
    %279 = arith.minsi %278, %c63_i32_204 : i32
    %280 = arith.index_cast %279 : i32 to index
    %c0_205 = arith.constant 0 : index
    %281 = vector.load %arg2[%280, %c0_205] : memref<64x16xf32, #tpu.memory_space<vmem>>, vector<1x16xf32>
    %c6_206 = arith.constant 6 : index
    %c48_207 = arith.constant 48 : index
    %282 = vector.load %arg8[%c6_206, %c48_207] : memref<8x128xf32, #tpu.memory_space<vmem>>, vector<1x16xf32>
    tpu.vector_store %arg8[%c6_206, %c48_207], %281 {strides = array<i32>} : memref<8x128xf32, #tpu.memory_space<vmem>>, vector<1x16xf32>,
    %c7_i32 = arith.constant 7 : i32
    %283 = arith.addi %0, %c7_i32 : i32
    %c4_i32_208 = arith.constant 4 : i32
    %284 = arith.muli %283, %c4_i32_208 : i32
    %c0_i32_209 = arith.constant 0 : i32
    %285 = arith.addi %284, %c0_i32_209 : i32
    %286 = arith.index_cast %285 : i32 to index
    %287 = memref.load %arg1[%286] : memref<32xi32, #tpu.memory_space<smem>>
    %c0_i32_210 = arith.constant 0 : i32
    %288 = arith.maxsi %287, %c0_i32_210 : i32
    %c63_i32_211 = arith.constant 63 : i32
    %289 = arith.minsi %288, %c63_i32_211 : i32
    %290 = arith.index_cast %289 : i32 to index
    %c0_212 = arith.constant 0 : index
    %291 = vector.load %arg2[%290, %c0_212] : memref<64x16xf32, #tpu.memory_space<vmem>>, vector<1x16xf32>
    %c7 = arith.constant 7 : index
    %c0_213 = arith.constant 0 : index
    %292 = vector.load %arg8[%c7, %c0_213] : memref<8x128xf32, #tpu.memory_space<vmem>>, vector<1x16xf32>
    tpu.vector_store %arg8[%c7, %c0_213], %291 {strides = array<i32>} : memref<8x128xf32, #tpu.memory_space<vmem>>, vector<1x16xf32>,
    %c7_i32_214 = arith.constant 7 : i32
    %293 = arith.addi %0, %c7_i32_214 : i32
    %c4_i32_215 = arith.constant 4 : i32
    %294 = arith.muli %293, %c4_i32_215 : i32
    %c1_i32_216 = arith.constant 1 : i32
    %295 = arith.addi %294, %c1_i32_216 : i32
    %296 = arith.index_cast %295 : i32 to index
    %297 = memref.load %arg1[%296] : memref<32xi32, #tpu.memory_space<smem>>
    %c0_i32_217 = arith.constant 0 : i32
    %298 = arith.maxsi %297, %c0_i32_217 : i32
    %c63_i32_218 = arith.constant 63 : i32
    %299 = arith.minsi %298, %c63_i32_218 : i32
    %300 = arith.index_cast %299 : i32 to index
    %c0_219 = arith.constant 0 : index
    %301 = vector.load %arg2[%300, %c0_219] : memref<64x16xf32, #tpu.memory_space<vmem>>, vector<1x16xf32>
    %c7_220 = arith.constant 7 : index
    %c16_221 = arith.constant 16 : index
    %302 = vector.load %arg8[%c7_220, %c16_221] : memref<8x128xf32, #tpu.memory_space<vmem>>, vector<1x16xf32>
    tpu.vector_store %arg8[%c7_220, %c16_221], %301 {strides = array<i32>} : memref<8x128xf32, #tpu.memory_space<vmem>>, vector<1x16xf32>,
    %c7_i32_222 = arith.constant 7 : i32
    %303 = arith.addi %0, %c7_i32_222 : i32
    %c4_i32_223 = arith.constant 4 : i32
    %304 = arith.muli %303, %c4_i32_223 : i32
    %c2_i32_224 = arith.constant 2 : i32
    %305 = arith.addi %304, %c2_i32_224 : i32
    %306 = arith.index_cast %305 : i32 to index
    %307 = memref.load %arg1[%306] : memref<32xi32, #tpu.memory_space<smem>>
    %c0_i32_225 = arith.constant 0 : i32
    %308 = arith.maxsi %307, %c0_i32_225 : i32
    %c63_i32_226 = arith.constant 63 : i32
    %309 = arith.minsi %308, %c63_i32_226 : i32
    %310 = arith.index_cast %309 : i32 to index
    %c0_227 = arith.constant 0 : index
    %311 = vector.load %arg2[%310, %c0_227] : memref<64x16xf32, #tpu.memory_space<vmem>>, vector<1x16xf32>
    %c7_228 = arith.constant 7 : index
    %c32_229 = arith.constant 32 : index
    %312 = vector.load %arg8[%c7_228, %c32_229] : memref<8x128xf32, #tpu.memory_space<vmem>>, vector<1x16xf32>
    tpu.vector_store %arg8[%c7_228, %c32_229], %311 {strides = array<i32>} : memref<8x128xf32, #tpu.memory_space<vmem>>, vector<1x16xf32>,
    %c7_i32_230 = arith.constant 7 : i32
    %313 = arith.addi %0, %c7_i32_230 : i32
    %c4_i32_231 = arith.constant 4 : i32
    %314 = arith.muli %313, %c4_i32_231 : i32
    %c3_i32_232 = arith.constant 3 : i32
    %315 = arith.addi %314, %c3_i32_232 : i32
    %316 = arith.index_cast %315 : i32 to index
    %317 = memref.load %arg1[%316] : memref<32xi32, #tpu.memory_space<smem>>
    %c0_i32_233 = arith.constant 0 : i32
    %318 = arith.maxsi %317, %c0_i32_233 : i32
    %c63_i32_234 = arith.constant 63 : i32
    %319 = arith.minsi %318, %c63_i32_234 : i32
    %320 = arith.index_cast %319 : i32 to index
    %c0_235 = arith.constant 0 : index
    %321 = vector.load %arg2[%320, %c0_235] : memref<64x16xf32, #tpu.memory_space<vmem>>, vector<1x16xf32>
    %c7_236 = arith.constant 7 : index
    %c48_237 = arith.constant 48 : index
    %322 = vector.load %arg8[%c7_236, %c48_237] : memref<8x128xf32, #tpu.memory_space<vmem>>, vector<1x16xf32>
    tpu.vector_store %arg8[%c7_236, %c48_237], %321 {strides = array<i32>} : memref<8x128xf32, #tpu.memory_space<vmem>>, vector<1x16xf32>,
    %c0_238 = arith.constant 0 : index
    %c0_239 = arith.constant 0 : index
    %323 = vector.load %arg8[%c0_238, %c0_239] : memref<8x128xf32, #tpu.memory_space<vmem>>, vector<8x128xf32>
    %324 = arith.truncf %323 : vector<8x128xf32> to vector<8x128xbf16>
    %c0_240 = arith.constant 0 : index
    %c0_241 = arith.constant 0 : index
    %325 = vector.load %arg3[%c0_240, %c0_241] : memref<128x128xbf16, #tpu.memory_space<vmem>>, vector<128x128xbf16>
    %cst_242 = arith.constant dense<0.000000e+00> : vector<8x128xf32>
    %326 = tpu.matmul %324, %325, %cst_242 {dimension_numbers = #tpu.dot_dimension_numbers<[1], [0], [0], [1], [0, 0, 1, 1], [], []>} : vector<8x128xbf16>, vector<128x128xbf16>, vector<8x128xf32> -> vector<8x128xf32>
    %c0_243 = arith.constant 0 : index
    %c0_244 = arith.constant 0 : index
    %327 = vector.load %arg4[%c0_243, %c0_244] : memref<1x128xf32, #tpu.memory_space<vmem>>, vector<1x128xf32>
    %328 = vector.broadcast %327 : vector<1x128xf32> to vector<8x128xf32>
    %329 = arith.addf %326, %328 : vector<8x128xf32>
    %cst_245 = arith.constant 0.000000e+00 : f32
    %330 = vector.broadcast %cst_245 : f32 to vector<8x128xf32>
    %331 = arith.maximumf %329, %330 : vector<8x128xf32>
    %332 = arith.truncf %331 : vector<8x128xf32> to vector<8x128xbf16>
    %c0_246 = arith.constant 0 : index
    %c0_247 = arith.constant 0 : index
    %333 = vector.load %arg5[%c0_246, %c0_247] : memref<128x128xbf16, #tpu.memory_space<vmem>>, vector<128x128xbf16>
    %cst_248 = arith.constant dense<0.000000e+00> : vector<8x128xf32>
    %334 = tpu.matmul %332, %333, %cst_248 {dimension_numbers = #tpu.dot_dimension_numbers<[1], [0], [0], [1], [0, 0, 1, 1], [], []>} : vector<8x128xbf16>, vector<128x128xbf16>, vector<8x128xf32> -> vector<8x128xf32>
    %c0_249 = arith.constant 0 : index
    %c0_250 = arith.constant 0 : index
    %335 = vector.load %arg6[%c0_249, %c0_250] : memref<1x128xf32, #tpu.memory_space<vmem>>, vector<1x128xf32>
    %336 = vector.broadcast %335 : vector<1x128xf32> to vector<8x128xf32>
    %337 = arith.addf %334, %336 : vector<8x128xf32>
    %cst_251 = arith.constant dense<0xFF800000> : vector<8xf32>
    %338 = vector.multi_reduction <maximumf>, %337, %cst_251 [1] : vector<8x128xf32> to vector<8xf32>
    %339 = vector.shape_cast %338 : vector<8xf32> to vector<8x1xf32>
    %340 = vector.broadcast %339 : vector<8x1xf32> to vector<8x128xf32>
    %341 = arith.subf %337, %340 : vector<8x128xf32>
    %342 = math.exp %341 : vector<8x128xf32>
    %cst_252 = arith.constant dense<0.000000e+00> : vector<8xf32>
    %343 = vector.multi_reduction <add>, %342, %cst_252 [1] : vector<8x128xf32> to vector<8xf32>
    %344 = vector.shape_cast %343 : vector<8xf32> to vector<8x1xf32>
    %345 = math.log %344 : vector<8x1xf32>
    %346 = vector.broadcast %345 : vector<8x1xf32> to vector<8x128xf32>
    %347 = arith.subf %341, %346 : vector<8x128xf32>
    %c0_253 = arith.constant 0 : index
    %c0_254 = arith.constant 0 : index
    %348 = vector.load %arg7[%c0_253, %c0_254] : memref<8x128xf32, #tpu.memory_space<vmem>>, vector<8x128xf32>
    tpu.vector_store %arg7[%c0_253, %c0_254], %347 {strides = array<i32>} : memref<8x128xf32, #tpu.memory_space<vmem>>, vector<8x128xf32>,
    return
  }
  func.func @transform_0(%arg0: i32, %arg1: memref<32xi32, #tpu.memory_space<smem>>) -> (i32, i32) {
    %c0_i32 = arith.constant 0 : i32
    %c0_i32_0 = arith.constant 0 : i32
    %c0_i32_1 = arith.constant 0 : i32
    return %c0_i32, %c0_i32_0 : i32, i32
  }
  func.func @transform_1(%arg0: i32, %arg1: memref<32xi32, #tpu.memory_space<smem>>) -> (i32, i32) {
    %c0_i32 = arith.constant 0 : i32
    %c0_i32_0 = arith.constant 0 : i32
    %c0_i32_1 = arith.constant 0 : i32
    return %c0_i32, %c0_i32_0 : i32, i32
  }
  func.func @transform_2(%arg0: i32, %arg1: memref<32xi32, #tpu.memory_space<smem>>) -> (i32, i32) {
    %c0_i32 = arith.constant 0 : i32
    %c0_i32_0 = arith.constant 0 : i32
    %c0_i32_1 = arith.constant 0 : i32
    return %c0_i32, %c0_i32_0 : i32, i32
  }
  func.func @transform_3(%arg0: i32, %arg1: memref<32xi32, #tpu.memory_space<smem>>) -> (i32, i32) {
    %c0_i32 = arith.constant 0 : i32
    %c0_i32_0 = arith.constant 0 : i32
    %c0_i32_1 = arith.constant 0 : i32
    return %c0_i32, %c0_i32_0 : i32, i32
  }
  func.func @transform_4(%arg0: i32, %arg1: memref<32xi32, #tpu.memory_space<smem>>) -> (i32, i32) {
    %c0_i32 = arith.constant 0 : i32
    %c0_i32_0 = arith.constant 0 : i32
    %c0_i32_1 = arith.constant 0 : i32
    return %c0_i32, %c0_i32_0 : i32, i32
  }
  func.func @transform_5(%arg0: i32, %arg1: memref<32xi32, #tpu.memory_space<smem>>) -> (i32, i32) {
    %c0_i32 = arith.constant 0 : i32
    %c0_i32_0 = arith.constant 0 : i32
    return %arg0, %c0_i32 : i32, i32
  }
}

</mosaic_0001>

<bundles_post_ra>
// kernel: tpu_custom_call.1
= control target key start
LH: loop header
LB: loop body
LE: loop exit
PB: predicated region body
PF: predicated region fallthrough
CT: control target
= control target key end

     0   :  { %s1550_s0 = inlined_call_operand.vmem [shape: s32[32], index: 0, kind: input, shape index: {}]   ;;  %s1551_s1 = inlined_call_operand.vmem [shape: f32[64,16], index: 1, kind: input, shape index: {}]   ;;  %s1552_s2 = inlined_call_operand.vmem [shape: bf16[128,128], index: 2, kind: input, shape index: {}]   ;;  %s1553_s3 = inlined_call_operand.vmem [shape: f32[1,128], index: 3, kind: input, shape index: {}]   ;;  %s1554_s4 = inlined_call_operand.hbm [shape: bf16[128,128], index: 4, kind: input, shape index: {}]   ;;  %s1555_s5 = inlined_call_operand.vmem [shape: f32[1,128], index: 5, kind: input, shape index: {}]   ;;  %s1556_s6 = inlined_call_operand.hbm [shape: f32[8,128], index: 6, kind: output, shape index: {}]  }
   0x1   :  { %s11_s23 = sshll.u32 %s1550_s0, 4  ;;  %s12_s23 = int_to_ptr.vmem [resolvable:$true] %s11_s23 }
   0x2   :  { %s1085_s24 = scalar_lea.vmem %s12_s23, 16  ;;  %p1090_p1 = scmp.lt.s32.totalorder %s12_s23, %s12_s23 }
   0x3   :  { %p1086_p0 = scmp.ne.s32.totalorder %s12_s23, %s1085_s24  ;;  %p1091_p2 = scmp.lt.s32.totalorder %s1085_s24, %s1085_s24 }
   0x5   :  { %p1092_p3 = por %p1091_p2, %p1090_p1 }
   0x7   :  { %p1093_p4 = pnand %p1092_p3, %p1086_p0 }
   0x9   :  { %1096 = shalt.err (!%p1093_p4)  }
   0xa   :  { %s1147_s25 = smov [#allocation4]  }
   0xb   :  { %14 = dma.vmem_to_smem %s12_s23, 16, %s1147_s25, [#allocation3] }
   0xc   :  { %1141 = dma.done.wait [#allocation3], 16 }
   0xd   :  { %1142 = vsyncadd [#allocation3], 4294967280 }
   0xe   :  { %16 = sfence }
   0xf   :  { %17 = vsyncpa [#allocation6], 0 }
  0x10   :  { %18 = vsyncpa [#allocation7], 0  ;;  %s1148_s26 = smov [#allocation5]   ;;  %s1097_s29 = scalar_lea.hbm %s1554_s4, 1024 }
  0x11   :  { %s30_s27 = sshll.u32 %s1148_s26, 4  ;;  %p1098_p5 = scmp.ne.s32.totalorder %s1554_s4, %s1097_s29  ;;  %s31_s27 = int_to_ptr.vmem [resolvable:$true] %s30_s27 }
  0x12   :  { %p1101_p6 = scmp.lt.u32.totalorder %s1097_s29, %s1554_s4 }
  0x14   :  { %p1103_p7 = pnand %p1101_p6, %p1098_p5 }
  0x16   :  { %1106 = shalt.err (!%p1103_p7)
}
  0x17   :  { %s1107_s10 = scalar_lea.vmem %s31_s27, 1024  ;;  %p1112_p9 = scmp.lt.s32.totalorder %s31_s27, %s31_s27 }
  0x18   :  { %p1108_p8 = scmp.ne.s32.totalorder %s31_s27, %s1107_s10  ;;  %p1113_p10 = scmp.lt.s32.totalorder %s1107_s10, %s1107_s10 }
  0x1a   :  { %p1114_p11 = por %p1113_p10, %p1112_p9 }
  0x1c   :  { %p1115_p12 = pnand %p1114_p11, %p1108_p8 }
  0x1e   :  { %1118 = shalt.err (!%p1115_p12)
}
  0x1f   :  { %s1149_s11 = smov 64   ;;  %s1150_s12 = smov 4  }
  0x20   :  { %36 = dma.hbm_to_vmem [thread:$0]  %s1554_s4, 1024, %s31_s27, [#allocation6], %s1149_s11, %s1149_s11, %s1150_s12  }
  0x21   :  { %1143 = dma.done.wait [#allocation6], 1024  }
  0x22   :  { %1144 = vsyncadd [#allocation6], 4294966272  ;;  %s777_s15 = sld [smem:[#allocation4 + $0x9]]  ;;  %v1151_v0 = vmov 0.0   ;;  %s1210_s17 = sld [smem:[#allocation4 + $0xd]]  ;;  %v1065_v9 = vld [vmem:[%s1552_s2] sm:$0xff]  }
  0x23   :  { %s729_s16 = sld [smem:[#allocation4 + $0x1]]  ;;  %44 = vst [vmem:[#allocation2] sm:$0xff] %v1151_v0  ;;  %1015 = vmatprep.subr.bf16.mxu0 %v1151_v0  ;;  %1035 = vmatprep.subr.bf16.mxu1 %v1151_v0  ;;  %s1212_s18 = sld [smem:[#allocation4 + $0x5]]  ;;  %v1066_v14 = vld [vmem:[%s1552_s2 + $0x8] sm:$0xff]   ;;  %v1067_v15 = vld [vmem:[%s1552_s2 + $0x10] sm:$0xff]   ;;  %v1068_v18 = vld [vmem:[%s1552_s2 + $0x18] sm:$0xff]  }
  0x24   :  { %s1214_s19 = sld [smem:[#allocation4 + $0x15]]  ;;  %s1216_s20 = sld [smem:[#allocation4 + $0x11]]  ;;  %1016 = vmatpush3.bf16.msra.mxu0 %v1065_v9  ;;  %v1069_v21 = vld [vmem:[%s1552_s2 + $0x20] sm:$0xff]   ;;  %v1070_v26 = vld [vmem:[%s1552_s2 + $0x28] sm:$0xff]   ;;  %v1071_v28 = vld [vmem:[%s1552_s2 + $0x30] sm:$0xff]   ;;  %vm1155_vm0 = vmmov 0  }
  0x25   :  { %s1218_s4 = sld [smem:[#allocation4 + $0x1d]]  ;;  %s1220_s21 = sld [smem:[#allocation4 + $0x19]]  ;;  %1017 = vmatprep.subr.bf16.mxu0 %v1151_v0  ;;  %1031 = vmatprep.mubr.msk.bf16.mxu0 %vm1155_vm0, %v1151_v0  ;;  %v1072_v29 = vld [vmem:[%s1552_s2 + $0x38] sm:$0xff]   ;;  %v1073_v32 = vld [vmem:[#allocation5] sm:$0xff]   ;;  %v1074_v34 = vld [vmem:[#allocation5 + $0x8] sm:$0xff]   ;;  %vm53_vm1 = vcmask 122880  }
  0x26   :  { %s1222_s22 = sld [smem:[#allocation4 + $0x6]]  ;;  %s1224_s23 = sld [smem:[#allocation4 + $0x2]]  ;;  %1051 = vmatprep.mubr.msk.bf16.mxu1 %vm1155_vm0, %v1151_v0  ;;  %1036 = vmatpush3.bf16.msra.mxu1 %v1073_v32  ;;  %v1075_v36 = vld [vmem:[#allocation5 + $0x10] sm:$0xff]   ;;  %v1076_v38 = vld [vmem:[#allocation5 + $0x18] sm:$0xff]   ;;  %v1077_v40 = vld [vmem:[#allocation5 + $0x20] sm:$0xff]   ;;  %vm67_vm2 = vcmask 254080  }
  0x27   :  { %s1226_s24 = sld [smem:[#allocation4 + $0xe]]  ;;  %s1228_s25 = sld [smem:[#allocation4 + $0xa]]  ;;  %1037 = vmatprep.subr.bf16.mxu1 %v1151_v0  ;;  %v1078_v42 = vld [vmem:[#allocation5 + $0x28] sm:$0xff]   ;;  %vm81_vm3 = vcmask 385280   ;;  %vm95_vm4 = vcmask 516480  }
  0x28   :  { %p158_p13 = scmp.gt.s32.totalorder %s777_s15, 0  ;;  %p778_p0 = scmp.lt.s32.totalorder %s777_s15, 63  ;;  %1018 = vmatpush3.bf16.msra.mxu0 %v1066_v14 }
  0x29   :  { %p57_p1 = scmp.gt.s32.totalorder %s729_s16, 0  ;;  %p730_p2 = scmp.lt.s32.totalorder %s729_s16, 63  ;;  %1019 = vmatprep.subr.bf16.mxu0 %v1151_v0 }
  0x2a   :  { %s1558_s15 = smov (!%p158_p13, %s777_s15), 0  ;;  %p207_p3 = scmp.gt.s32.totalorder %s1210_s17, 0  ;;  %1038 = vmatpush3.bf16.msra.mxu1 %v1074_v34 }
  0x2b   :  { %s1560_s16 = smov (!%p57_p1, %s729_s16), 0  ;;  %s1562_s15 = smov (!%p778_p0, %s1558_s15), 63  ;;  %1039 = vmatprep.subr.bf16.mxu1 %v1151_v0 }
  0x2c   :  { %s1564_s16 = smov (!%p730_p2, %s1560_s16), 63  ;;  %s162_s28 = scalar_lea.vmem %s1551_s1, %s1562_s15  ;;  %1020 = vmatpush3.bf16.msra.mxu0 %v1067_v15 }
  0x2d   :  { %v163_v1 = vld [vmem:[%s162_s28] sm:$0x1]  ;;  %s61_s30 = scalar_lea.vmem %s1551_s1, %s1564_s16  ;;  %p802_p4 = scmp.lt.s32.totalorder %s1210_s17, 63  ;;  %1021 = vmatprep.subr.bf16.mxu0 %v1151_v0 }
  0x2e   :  { %s1152_s7 = smov 16   ;;  %v62_v2 = vld [vmem:[%s61_s30] sm:$0x1]  ;;  %s1566_s17 = smov (!%p207_p3, %s1210_s17), 0  ;;  %1040 = vmatpush3.bf16.msra.mxu1 %v1075_v36 }
  0x2f   :  { %165 = vrot.lane.b32.xlu1 %v163_v1, %s1152_s7  ;;  %64 = vrot.lane.b32.xlu0 %v62_v2, %s1152_s7  ;;  %p109_p5 = scmp.gt.s32.totalorder %s1212_s18, 0  ;;  %p754_p6 = scmp.lt.s32.totalorder %s1212_s18, 63 }
  0x30   :  { %s1568_s17 = smov (!%p802_p4, %s1566_s17), 63  ;;  %p305_p7 = scmp.gt.s32.totalorder %s1214_s19, 0  ;;  %1022 = vmatpush3.bf16.msra.mxu0 %v1068_v18  ;;  %1041 = vmatprep.subr.bf16.mxu1 %v1151_v0 }
  0x31   :  { %s1570_s18 = smov (!%p109_p5, %s1212_s18), 0  ;;  %s211_s10 = scalar_lea.vmem %s1551_s1, %s1568_s17  ;;  %1023 = vmatprep.subr.bf16.mxu0 %v1151_v0 }
  0x32   :  { %v212_v3 = vld [vmem:[%s211_s10] sm:$0x1]  ;;  %s1572_s18 = smov (!%p754_p6, %s1570_s18), 63  ;;  %p850_p8 = scmp.lt.s32.totalorder %s1214_s19, 63  ;;  %1042 = vmatpush3.bf16.msra.mxu1 %v1076_v38 }
  0x33   :  { %214 = vrot.lane.b32.xlu1 %v212_v3, %s1152_s7  ;;  %s306_s11 = scalar_select %p305_p7, %s1214_s19, 0  ;;  %1043 = vmatprep.subr.bf16.mxu1 %v1151_v0 }
  0x34   :  { %s113_s14 = scalar_lea.vmem %s1551_s1, %s1572_s18  ;;  %p256_p9 = scmp.gt.s32.totalorder %s1216_s20, 0  ;;  %1024 = vmatpush3.bf16.msra.mxu0 %v1069_v21 }
  0x35   :  { %v114_v4 = vld [vmem:[%s113_s14] sm:$0x1]  ;;  %p826_p10 = scmp.lt.s32.totalorder %s1216_s20, 63  ;;  %s1574_s11 = smov (!%p850_p8, %s306_s11), 63  ;;  %1025 = vmatprep.subr.bf16.mxu0 %v1151_v0 }
  0x36   :  { %116 = vrot.lane.b32.xlu0 %v114_v4, %s1152_s7  ;;  %s1576_s20 = smov (!%p256_p9, %s1216_s20), 0  ;;  %s309_s17 = scalar_lea.vmem %s1551_s1, %s1574_s11  ;;  %1044 = vmatpush3.bf16.msra.mxu1 %v1077_v40 }
  0x37   :  { %p403_p11 = scmp.gt.s32.totalorder %s1218_s4, 0  ;;  %v310_v5 = vld [vmem:[%s309_s17] sm:$0x1]  ;;  %s1578_s20 = smov (!%p826_p10, %s1576_s20), 63  ;;  %1045 = vmatprep.subr.bf16.mxu1 %v1151_v0 }
  0x38   :  { %312 = vrot.lane.b32.xlu1 %v310_v5, %s1152_s7  ;;  %s260_s27 = scalar_lea.vmem %s1551_s1, %s1578_s20  ;;  %p898_p12 = scmp.lt.s32.totalorder %s1218_s4, 63  ;;  %1026 = vmatpush3.bf16.msra.mxu0 %v1070_v26 }
  0x39   :  { %s404_s18 = scalar_select %p403_p11, %s1218_s4, 0  ;;  %v261_v6 = vld [vmem:[%s260_s27] sm:$0x1]  ;;  %1027 = vmatprep.subr.bf16.mxu0 %v1151_v0 }
  0x3a   :  { %p354_p13 = scmp.gt.s32.totalorder %s1220_s21, 0  ;;  %p874_p0 = scmp.lt.s32.totalorder %s1220_s21, 63  ;;  %263 = vrot.lane.b32.xlu0 %v261_v6, %s1152_s7  ;;  %1046 = vmatpush3.bf16.msra.mxu1 %v1078_v42 }
  0x3b   :  { %s1580_s18 = smov (!%p898_p12, %s404_s18), 63  ;;  %p122_p1 = scmp.gt.s32.totalorder %s1222_s22, 0  ;;  %1047 = vmatprep.subr.bf16.mxu1 %v1151_v0 }
  0x3c   :  { %s1582_s21 = smov (!%p354_p13, %s1220_s21), 0  ;;  %s407_s29 = scalar_lea.vmem %s1551_s1, %s1580_s18  ;;  %1028 = vmatpush3.bf16.msra.mxu0 %v1071_v28 }
  0x3d   :  { %v408_v7 = vld [vmem:[%s407_s29] sm:$0x1]  ;;  %s1584_s21 = smov (!%p874_p0, %s1582_s21), 63  ;;  %p760_p2 = scmp.lt.s32.totalorder %s1222_s22, 63  ;;  %1029 = vmatprep.subr.bf16.mxu0 %v1151_v0 }
  0x3e   :  { %410 = vrot.lane.b32.xlu1 %v408_v7, %s1152_s7  ;;  %s123_s20 = scalar_select %p122_p1, %s1222_s22, 0 }
  0x3f   :  { %s358_s8 = scalar_lea.vmem %s1551_s1, %s1584_s21  ;;  %p71_p3 = scmp.gt.s32.totalorder %s1224_s23, 0 }
  0x40   :  { %v359_v8 = vld [vmem:[%s358_s8] sm:$0x1]  ;;  %p736_p4 = scmp.lt.s32.totalorder %s1224_s23, 63  ;;  %s1586_s20 = smov (!%p760_p2, %s123_s20), 63  ;;  %1030 = vmatpush3.bf16.msra.mxu0 %v1072_v29 }
  0x41   :  { %361 = vrot.lane.b32.xlu0 %v359_v8, %s1152_s7  ;;  %s1588_s23 = smov (!%p71_p3, %s1224_s23), 0  ;;  %s126_s21 = scalar_lea.vmem %s1551_s1, %s1586_s20 }
  0x42   :  { %p220_p5 = scmp.gt.s32.totalorder %s1226_s24, 0  ;;  %v127_v10 = vld [vmem:[%s126_s21] sm:$0x1]  ;;  %s1590_s23 = smov (!%p736_p4, %s1588_s23), 63 }
  0x43   :  { %s1153_s22 = smov 32   ;;  %s75_s15 = scalar_lea.vmem %s1551_s1, %s1590_s23 }
  0x44   :  { %129 = vrot.lane.b32.xlu1 %v127_v10, %s1153_s22  ;;  %s221_s7 = scalar_select %p220_p5, %s1226_s24, 0  ;;  %v76_v11 = vld [vmem:[%s75_s15] sm:$0x1]  ;;  %v1079_v10 = vld [vmem:[#allocation5 + $0x30] sm:$0xff]  }
  0x45   :  { %p808_p6 = scmp.lt.s32.totalorder %s1226_s24, 63  ;;  %p171_p7 = scmp.gt.s32.totalorder %s1228_s25, 0  ;;  %78 = vrot.lane.b32.xlu0 %v76_v11, %s1153_s22  ;;  %1048 = vmatpush3.bf16.msra.mxu1 %v1079_v10  ;;  %v1080_v11 = vld [vmem:[#allocation5 + $0x38] sm:$0xff]  }
  0x46   :  { %p784_p8 = scmp.lt.s32.totalorder %s1228_s25, 63  ;;  %s855_s19 = sld [smem:[#allocation4 + $0x16]]  ;;  %1049 = vmatprep.subr.bf16.mxu1 %v1151_v0 }
  0x47   :  { %s1592_s7 = smov (!%p808_p6, %s221_s7), 63  ;;  %s1594_s25 = smov (!%p171_p7, %s1228_s25), 0 }
  0x48   :  { %s224_s18 = scalar_lea.vmem %s1551_s1, %s1592_s7  ;;  %s1596_s25 = smov (!%p784_p8, %s1594_s25), 63 }
  0x49   :  { %v225_v12 = vld [vmem:[%s224_s18] sm:$0x1]  ;;  %s831_s26 = sld [smem:[#allocation4 + $0x12]]  ;;  %s1308_s27 = sld [smem:[#allocation4 + $0x1e]]  ;;  %1050 = vmatpush3.bf16.msra.mxu1 %v1080_v11 }
  0x4a   :  { %227 = vrot.lane.b32.xlu1 %v225_v12, %s1153_s22  ;;  %s175_s28 = scalar_lea.vmem %s1551_s1, %s1596_s25  ;;  %s1313_s0 = sld [smem:[#allocation4 + $0x1a]]  ;;  %v915_v12 = vld [vmem:[%s1553_s3] ss:$0 sm:$0xff] }
  0x4b   :  { %v176_v13 = vld [vmem:[%s175_s28] sm:$0x1]  ;;  %s1315_s29 = sld [smem:[#allocation4 + $0x7]]  ;;  %s1321_s30 = sld [smem:[#allocation4 + $0x3]] }
  0x4c   :  { %178 = vrot.lane.b32.xlu0 %v176_v13, %s1153_s22  ;;  %s1323_s8 = sld [smem:[#allocation4 + $0xf]]  ;;  %p318_p9 = scmp.gt.s32.totalorder %s855_s19, 0 }
  0x4d   :  { %p856_p10 = scmp.lt.s32.totalorder %s855_s19, 63  ;;  %s1325_s25 = sld [smem:[#allocation4 + $0xb]] }
  0x4e   :  { %s1327_s9 = sld [smem:[#allocation4 + $0x17]]  ;;  %s1598_s19 = smov (!%p318_p9, %s855_s19), 0 }
  0x4f   :  { %p269_p11 = scmp.gt.s32.totalorder %s831_s26, 0  ;;  %p832_p12 = scmp.lt.s32.totalorder %s831_s26, 63 }
  0x50   :  { %s1600_s19 = smov (!%p856_p10, %s1598_s19), 63  ;;  %p416_p13 = scmp.gt.s32.totalorder %s1308_s27, 0 }
  0x51   :  { %s1602_s26 = smov (!%p269_p11, %s831_s26), 0  ;;  %s322_s7 = scalar_lea.vmem %s1551_s1, %s1600_s19 }
  0x52   :  { %v323_v16 = vld [vmem:[%s322_s7] sm:$0x1]  ;;  %s1604_s26 = smov (!%p832_p12, %s1602_s26), 63  ;;  %p904_p0 = scmp.lt.s32.totalorder %s1308_s27, 63 }
  0x53   :  { %325 = vrot.lane.b32.xlu1 %v323_v16, %s1153_s22  ;;  %s417_s13 = scalar_select %p416_p13, %s1308_s27, 0 }
  0x54   :  { %s273_s16 = scalar_lea.vmem %s1551_s1, %s1604_s26  ;;  %p367_p1 = scmp.gt.s32.totalorder %s1313_s0, 0 }
  0x55   :  { %v274_v17 = vld [vmem:[%s273_s16] sm:$0x1]  ;;  %p880_p2 = scmp.lt.s32.totalorder %s1313_s0, 63  ;;  %s1606_s13 = smov (!%p904_p0, %s417_s13), 63 }
  0x56   :  { %276 = vrot.lane.b32.xlu0 %v274_v17, %s1153_s22  ;;  %s1608_s0 = smov (!%p367_p1, %s1313_s0), 0  ;;  %s420_s26 = scalar_lea.vmem %s1551_s1, %s1606_s13 }
  0x57   :  { %p135_p3 = scmp.gt.s32.totalorder %s1315_s29, 0  ;;  %v421_v19 = vld [vmem:[%s420_s26] sm:$0x1]  ;;  %s1610_s0 = smov (!%p880_p2, %s1608_s0), 63 }
  0x58   :  { %423 = vrot.lane.b32.xlu1 %v421_v19, %s1153_s22  ;;  %s371_s20 = scalar_lea.vmem %s1551_s1, %s1610_s0  ;;  %p766_p4 = scmp.lt.s32.totalorder %s1315_s29, 63 }
  0x59   :  { %s136_s27 = scalar_select %p135_p3, %s1315_s29, 0  ;;  %v372_v20 = vld [vmem:[%s371_s20] sm:$0x1] }
  0x5a   :  { %p85_p5 = scmp.gt.s32.totalorder %s1321_s30, 0  ;;  %p742_p6 = scmp.lt.s32.totalorder %s1321_s30, 63  ;;  %374 = vrot.lane.b32.xlu0 %v372_v20, %s1153_s22  ;;  %v924_v20 = vld [vmem:[%s1555_s5] ss:$0 sm:$0xff] }
  0x5b   :  { %s1612_s27 = smov (!%p766_p4, %s136_s27), 63  ;;  %p233_p7 = scmp.gt.s32.totalorder %s1323_s8, 0 }
  0x5c   :  { %s1614_s30 = smov (!%p85_p5, %s1321_s30), 0  ;;  %s139_s0 = scalar_lea.vmem %s1551_s1, %s1612_s27 }
  0x5d   :  { %v140_v22 = vld [vmem:[%s139_s0] sm:$0x1]  ;;  %s1616_s30 = smov (!%p742_p6, %s1614_s30), 63  ;;  %s1154_s29 = smov 48  }
  0x5e   :  { %142 = vrot.lane.b32.xlu1 %v140_v22, %s1154_s29  ;;  %s234_s22 = scalar_select %p233_p7, %s1323_s8, 0 }
  0x5f   :  { %s89_s13 = scalar_lea.vmem %s1551_s1, %s1616_s30  ;;  %p814_p8 = scmp.lt.s32.totalorder %s1323_s8, 63 }
  0x60   :  { %v90_v23 = vld [vmem:[%s89_s13] sm:$0x1]  ;;  %p184_p9 = scmp.gt.s32.totalorder %s1325_s25, 0  ;;  %p790_p10 = scmp.lt.s32.totalorder %s1325_s25, 63 }
  0x61   :  { %92 = vrot.lane.b32.xlu0 %v90_v23, %s1154_s29  ;;  %s1618_s22 = smov (!%p814_p8, %s234_s22), 63  ;;  %p331_p11 = scmp.gt.s32.totalorder %s1327_s9, 0 }
  0x62   :  { %s1620_s25 = smov (!%p184_p9, %s1325_s25), 0  ;;  %s237_s16 = scalar_lea.vmem %s1551_s1, %s1618_s22 }
  0x63   :  { %v238_v24 = vld [vmem:[%s237_s16] sm:$0x1]  ;;  %s1622_s25 = smov (!%p790_p10, %s1620_s25), 63  ;;  %p862_p12 = scmp.lt.s32.totalorder %s1327_s9, 63 }
  0x64   :  { %240 = vrot.lane.b32.xlu1 %v238_v24, %s1154_s29  ;;  %s332_s17 = scalar_select %p331_p11, %s1327_s9, 0 }
  0x65   :  { %s188_s8 = scalar_lea.vmem %s1551_s1, %s1622_s25  ;;  %s1394_s19 = sld [smem:[#allocation4 + $0x13]] }
  0x66   :  { %v189_v25 = vld [vmem:[%s188_s8] sm:$0x1]  ;;  %s1396_s23 = sld [smem:[#allocation4 + $0x1f]]  ;;  %s1624_s17 = smov (!%p862_p12, %s332_s17), 63 }
  0x67   :  { %191 = vrot.lane.b32.xlu0 %v189_v25, %s1154_s29  ;;  %s1402_s24 = sld [smem:[#allocation4 + $0x1b]]  ;;  %s1404_s25 = sld [smem:[#allocation4 + $0x8]] }
  0x68   :  { %s335_s20 = scalar_lea.vmem %s1551_s1, %s1624_s17  ;;  %s1409_s4 = sld [smem:[#allocation4]] }
  0x69   :  { %v336_v27 = vld [vmem:[%s335_s20] sm:$0x1]  ;;  %s1411_s10 = sld [smem:[#allocation4 + $0xc]]  ;;  %s1419_s0 = sld [smem:[#allocation4 + $0x10]] }
  0x6a   :  { %s1413_s11 = sld [smem:[#allocation4 + $0x4]]  ;;  %338 = vrot.lane.b32.xlu1 %v336_v27, %s1154_s29  ;;  %s867_s17 = sld [smem:[#allocation4 + $0x18]] }
  0x6b   :  { %s1417_s12 = sld [smem:[#allocation4 + $0x14]]  ;;  %p282_p13 = scmp.gt.s32.totalorder %s1394_s19, 0 }
  0x6c   :  { %p838_p0 = scmp.lt.s32.totalorder %s1394_s19, 63  ;;  %p429_p1 = scmp.gt.s32.totalorder %s1396_s23, 0 }
  0x6d   :  { %p910_p2 = scmp.lt.s32.totalorder %s1396_s23, 63  ;;  %s1626_s19 = smov (!%p282_p13, %s1394_s19), 0 }
  0x6e   :  { %s1628_s23 = smov (!%p429_p1, %s1396_s23), 0  ;;  %s1630_s19 = smov (!%p838_p0, %s1626_s19), 63 }
  0x6f   :  { %s1632_s23 = smov (!%p910_p2, %s1628_s23), 63  ;;  %s286_s16 = scalar_lea.vmem %s1551_s1, %s1630_s19 }
  0x70   :  { %p380_p3 = scmp.gt.s32.totalorder %s1402_s24, 0  ;;  %v287_v30 = vld [vmem:[%s286_s16] sm:$0x1]  ;;  %s433_s30 = scalar_lea.vmem %s1551_s1, %s1632_s23 }
  0x71   :  { %p886_p4 = scmp.lt.s32.totalorder %s1402_s24, 63  ;;  %289 = vrot.lane.b32.xlu0 %v287_v30, %s1154_s29  ;;  %v434_v31 = vld [vmem:[%s433_s30] sm:$0x1]  ;;  %p149_p5 = scmp.gt.s32.totalorder %s1404_s25, 0 }
  0x72   :  { %s1634_s24 = smov (!%p380_p3, %s1402_s24), 0  ;;  %436 = vrot.lane.b32.xlu1 %v434_v31, %s1154_s29  ;;  %p772_p6 = scmp.lt.s32.totalorder %s1404_s25, 63 }
  0x73   :  { %s1636_s24 = smov (!%p886_p4, %s1634_s24), 63  ;;  %s1638_s25 = smov (!%p149_p5, %s1404_s25), 0 }
  0x74   :  { %s384_s19 = scalar_lea.vmem %s1551_s1, %s1636_s24  ;;  %p47_p7 = scmp.gt.s32.totalorder %s1409_s4, 0 }
  0x75   :  { %v385_v33 = vld [vmem:[%s384_s19] sm:$0x1]  ;;  %s1640_s25 = smov (!%p772_p6, %s1638_s25), 63  ;;  %p724_p8 = scmp.lt.s32.totalorder %s1409_s4, 63 }
  0x76   :  { %387 = vrot.lane.b32.xlu0 %v385_v33, %s1154_s29  ;;  %s48_s23 = scalar_select %p47_p7, %s1409_s4, 0 }
  0x77   :  { %s153_s9 = scalar_lea.vmem %s1551_s1, %s1640_s25  ;;  %p198_p9 = scmp.gt.s32.totalorder %s1411_s10, 0 }
  0x78   :  { %v154_v35 = vld [vmem:[%s153_s9] sm:$0x1]  ;;  %p796_p10 = scmp.lt.s32.totalorder %s1411_s10, 63  ;;  %s1642_s23 = smov (!%p724_p8, %s48_s23), 63 }
  0x79   :  { %155 = vst.msk [vmem:[#allocation2 + $0x2] sm:$0x1] %vm53_vm1, %v154_v35  ;;  %s1644_s10 = smov (!%p198_p9, %s1411_s10), 0  ;;  %s51_s25 = scalar_lea.vmem %s1551_s1, %s1642_s23 }
  0x7a   :  { %p100_p11 = scmp.gt.s32.totalorder %s1413_s11, 0  ;;  %v52_v37 = vld [vmem:[%s51_s25] sm:$0x1]  ;;  %s1646_s10 = smov (!%p796_p10, %s1644_s10), 63 }
  0x7b   :  { %54 = vst.msk [vmem:[#allocation2] sm:$0x1] %vm53_vm1, %v52_v37  ;;  %s202_s22 = scalar_lea.vmem %s1551_s1, %s1646_s10  ;;  %p748_p12 = scmp.lt.s32.totalorder %s1413_s11, 63 }
  0x7c   :  { %s101_s28 = scalar_select %p100_p11, %s1413_s11, 0  ;;  %v203_v39 = vld [vmem:[%s202_s22] sm:$0x1] }
  0x7d   :  { %p296_p13 = scmp.gt.s32.totalorder %s1417_s12, 0  ;;  %p844_p0 = scmp.lt.s32.totalorder %s1417_s12, 63  ;;  %204 = vst.msk [vmem:[#allocation2 + $0x3] sm:$0x1] %vm53_vm1, %v203_v39 }
  0x7e   :  { %s1648_s28 = smov (!%p748_p12, %s101_s28), 63  ;;  %p247_p1 = scmp.gt.s32.totalorder %s1419_s0, 0 }
  0x7f   :  { %s1650_s12 = smov (!%p296_p13, %s1417_s12), 0  ;;  %s104_s13 = scalar_lea.vmem %s1551_s1, %s1648_s28 }
  0x80   :  { %v105_v41 = vld [vmem:[%s104_s13] sm:$0x1]  ;;  %s1652_s12 = smov (!%p844_p0, %s1650_s12), 63  ;;  %p820_p2 = scmp.lt.s32.totalorder %s1419_s0, 63 }
  0x81   :  { %106 = vst.msk [vmem:[#allocation2 + $0x1] sm:$0x1] %vm53_vm1, %v105_v41  ;;  %s248_s10 = scalar_select %p247_p1, %s1419_s0, 0 }
  0x82   :  { %s300_s15 = scalar_lea.vmem %s1551_s1, %s1652_s12  ;;  %s891_s16 = sld [smem:[#allocation4 + $0x1c]] }
  0x83   :  { %v301_v43 = vld [vmem:[%s300_s15] sm:$0x1]  ;;  %s1654_s10 = smov (!%p820_p2, %s248_s10), 63  ;;  %p345_p5 = scmp.gt.s32.totalorder %s867_s17, 0 }
  0x84   :  { %302 = vst.msk [vmem:[#allocation2 + $0x5] sm:$0x1] %vm53_vm1, %v301_v43  ;;  %s251_s2 = scalar_lea.vmem %s1551_s1, %s1654_s10  ;;  %p868_p6 = scmp.lt.s32.totalorder %s867_s17, 63 }
  0x85   :  { %v252_v44 = vld [vmem:[%s251_s2] sm:$0x1]  ;;  %s1658_s17 = smov (!%p345_p5, %s867_s17), 0  ;;  %s1156_s3 = smov [#allocation8]  }
  0x86   :  { %253 = vst.msk [vmem:[#allocation2 + $0x4] sm:$0x1] %vm53_vm1, %v252_v44  ;;  %s1662_s17 = smov (!%p868_p6, %s1658_s17), 63  ;;  %s683_s24 = sshll.u32 %s1156_s3, 4  ;;  %s684_s24 = int_to_ptr.vmem [resolvable:$true] %s683_s24 }
  0x87   :  { %s349_s26 = scalar_lea.vmem %s1551_s1, %s1662_s17  ;;  %s1119_s5 = scalar_lea.vmem %s684_s24, 128 }
  0x88   :  { %p394_p3 = scmp.gt.s32.totalorder %s891_s16, 0  ;;  %p892_p4 = scmp.lt.s32.totalorder %s891_s16, 63  ;;  %v350_v48 = vld [vmem:[%s349_s26] sm:$0x1] }
  0x89   :  { %351 = vst.msk [vmem:[#allocation2 + $0x6] sm:$0x1] %vm53_vm1, %v350_v48  ;;  %p1120_p7 = scmp.ne.s32.totalorder %s684_s24, %s1119_s5  ;;  %p1124_p8 = scmp.lt.s32.totalorder %s684_s24, %s684_s24 }
  0x8a   :  { %s1656_s16 = smov (!%p394_p3, %s891_s16), 0  ;;  %p1125_p9 = scmp.lt.s32.totalorder %s1119_s5, %s1119_s5 }
  0x8b   :  { %s1660_s16 = smov (!%p892_p4, %s1656_s16), 63 }
  0x8c   :  { %s398_s8 = scalar_lea.vmem %s1551_s1, %s1660_s16  ;;  %p1126_p10 = por %p1125_p9, %p1124_p8 }
  0x8d   :  { %v399_v47 = vld [vmem:[%s398_s8] sm:$0x1] }
  0x8e   :  { %400 = vst.msk [vmem:[#allocation2 + $0x7] sm:$0x1] %vm53_vm1, %v399_v47  ;;  %p1127_p11 = pnand %p1126_p10, %p1120_p7 }
  0xa1   :  { %v166_v45 = vpop.permute.xlu1 %165  ;;  %v65_v46 = vpop.permute.xlu0 %64 }
  0xa2   :  { %168 = vst.msk [vmem:[#allocation2 + $0x2] sm:$0x1] %vm67_vm2, %v166_v45  ;;  %68 = vst.msk [vmem:[#allocation2] sm:$0x1] %vm67_vm2, %v65_v46 }
  0xa5   :  { %v215_v49 = vpop.permute.xlu1 %214 }
  0xa6   :  { %217 = vst.msk [vmem:[#allocation2 + $0x3] sm:$0x1] %vm67_vm2, %v215_v49 }
  0xa8   :  { %v117_v50 = vpop.permute.xlu0 %116 }
  0xa9   :  { %119 = vst.msk [vmem:[#allocation2 + $0x1] sm:$0x1] %vm67_vm2, %v117_v50 }
  0xaa   :  { %v313_v51 = vpop.permute.xlu1 %312 }
  0xab   :  { %315 = vst.msk [vmem:[#allocation2 + $0x5] sm:$0x1] %vm67_vm2, %v313_v51 }
  0xac   :  { %v264_v52 = vpop.permute.xlu0 %263 }
  0xad   :  { %266 = vst.msk [vmem:[#allocation2 + $0x4] sm:$0x1] %vm67_vm2, %v264_v52 }
  0xb0   :  { %v411_v53 = vpop.permute.xlu1 %410 }
  0xb1   :  { %413 = vst.msk [vmem:[#allocation2 + $0x7] sm:$0x1] %vm67_vm2, %v411_v53 }
  0xb3   :  { %v362_v54 = vpop.permute.xlu0 %361 }
  0xb4   :  { %364 = vst.msk [vmem:[#allocation2 + $0x6] sm:$0x1] %vm67_vm2, %v362_v54 }
  0xb6   :  { %v130_v55 = vpop.permute.xlu1 %129 }
  0xb7   :  { %132 = vst.msk [vmem:[#allocation2 + $0x1] sm:$0x1] %vm81_vm3, %v130_v55  ;;  %v79_v56 = vpop.permute.xlu0 %78 }
  0xb8   :  { %82 = vst.msk [vmem:[#allocation2] sm:$0x1] %vm81_vm3, %v79_v56 }
  0xbc   :  { %v228_v57 = vpop.permute.xlu1 %227 }
  0xbd   :  { %230 = vst.msk [vmem:[#allocation2 + $0x3] sm:$0x1] %vm81_vm3, %v228_v57 }
  0xbe   :  { %v179_v58 = vpop.permute.xlu0 %178 }
  0xbf   :  { %181 = vst.msk [vmem:[#allocation2 + $0x2] sm:$0x1] %vm81_vm3, %v179_v58 }
  0xc5   :  { %v326_v59 = vpop.permute.xlu1 %325 }
  0xc6   :  { %328 = vst.msk [vmem:[#allocation2 + $0x5] sm:$0x1] %vm81_vm3, %v326_v59 }
  0xc8   :  { %v277_v60 = vpop.permute.xlu0 %276 }
  0xc9   :  { %279 = vst.msk [vmem:[#allocation2 + $0x4] sm:$0x1] %vm81_vm3, %v277_v60 }
  0xca   :  { %v424_v61 = vpop.permute.xlu1 %423 }
  0xcb   :  { %426 = vst.msk [vmem:[#allocation2 + $0x7] sm:$0x1] %vm81_vm3, %v424_v61 }
  0xcc   :  { %v375_v62 = vpop.permute.xlu0 %374 }
  0xcd   :  { %377 = vst.msk [vmem:[#allocation2 + $0x6] sm:$0x1] %vm81_vm3, %v375_v62 }
  0xd0   :  { %v143_v63 = vpop.permute.xlu1 %142 }
  0xd1   :  { %145 = vst.msk [vmem:[#allocation2 + $0x1] sm:$0x1] %vm95_vm4, %v143_v63 }
  0xd3   :  { %v93_v1 = vpop.permute.xlu0 %92 }
  0xd4   :  { %96 = vst.msk [vmem:[#allocation2] sm:$0x1] %vm95_vm4, %v93_v1 }
  0xd6   :  { %v241_v2 = vpop.permute.xlu1 %240 }
  0xd7   :  { %243 = vst.msk [vmem:[#allocation2 + $0x3] sm:$0x1] %vm95_vm4, %v241_v2 }
  0xd9   :  { %v192_v3 = vpop.permute.xlu0 %191 }
  0xda   :  { %194 = vst.msk [vmem:[#allocation2 + $0x2] sm:$0x1] %vm95_vm4, %v192_v3 }
  0xdc   :  { %v339_v4 = vpop.permute.xlu1 %338 }
  0xdd   :  { %341 = vst.msk [vmem:[#allocation2 + $0x5] sm:$0x1] %vm95_vm4, %v339_v4 }
  0xe3   :  { %v290_v5 = vpop.permute.xlu0 %289 }
  0xe4   :  { %292 = vst.msk [vmem:[#allocation2 + $0x4] sm:$0x1] %vm95_vm4, %v290_v5  ;;  %v437_v6 = vpop.permute.xlu1 %436 }
  0xe5   :  { %439 = vst.msk [vmem:[#allocation2 + $0x7] sm:$0x1] %vm95_vm4, %v437_v6 }
  0xe8   :  { %v388_v7 = vpop.permute.xlu0 %387 }
  0xe9   :  { %390 = vst.msk [vmem:[#allocation2 + $0x6] sm:$0x1] %vm95_vm4, %v388_v7 }
  0xf0   :  { %v440_v8 = vld [vmem:[#allocation2] sm:$0xff] }
  0xf1   :  { %v441_v9 = vpack.c.bf16 %v440_v8, %v440_v8 }
  0xf3   :  { %1032 = vmatmul.mubr.bf16.vlgmr.msra.gmra.mrb[0].mxu0 %v441_v9 }
 0x1c6   :  { %v547_v13 = vpop.f32.mrb[0].mxu0 }
 0x1c7   :  { %v548_v14 = vadd.f32 %v915_v12, %v547_v13  ;;  %v1033_v15 = vpop.f32.mrb[1].mxu0 }
 0x1c8   :  { %v550_v16 = vpop.f32.mrb[2].mxu0 }
 0x1c9   :  { %v553_v17 = vmax.f32 %v548_v14, 0.0  ;;  %v1034_v18 = vpop.f32.mrb[3].mxu0 }
 0x1cb   :  { %v554_v19 = vpack.c.bf16 %v553_v17, %v553_v17 }
 0x1cd   :  { %1052 = vmatmul.mubr.bf16.vlgmr.msra.gmra.mrb[0].mxu1 %v554_v19 }
 0x2a0   :  { %v660_v21 = vpop.f32.mrb[0].mxu1 }
 0x2a1   :  { %v661_v0 = vadd.f32 %v924_v20, %v660_v21  ;;  %v1053_v22 = vpop.f32.mrb[1].mxu1 }
 0x2a2   :  { %v663_v23 = vpop.f32.mrb[2].mxu1 }
 0x2a3   :  { %666 = vmax.xlane.f32.xlu0 %v661_v0  ;;  %v1054_v24 = vpop.f32.mrb[3].mxu1 }
 0x330   :  { %v667_v25 = vpop.xlane.xlu0 %666 }
 0x331   :  { %v668_v26 = vsub.f32 %v661_v0, %v667_v25 }
 0x333   :  { %v669_v27 = vmul.f32 1.442695, %v668_v26 }
 0x335   :  { %1081 = vpow2.f32 %v669_v27 }
 0x33f   :  { %v1082_v28 = vpop.eup %1081 }
 0x340   :  { %671 = vadd.xlane.f32.xlu1 %v1082_v28 }
 0x3cd   :  { %v672_v29 = vpop.xlane.xlu1 %671 }
 0x3ce   :  { %1083 = vlog2.f32 %v672_v29 }
 0x3d8   :  { %v1084_v30 = vpop.eup %1083 }
 0x3d9   :  { %v674_v31 = vmul.f32 0.6931472, %v1084_v30 }
 0x3db   :  { %v675_v32 = vsub.f32 %v668_v26, %v674_v31 }
 0x3dd   :  { %676 = vst [vmem:[#allocation8] sm:$0xff] %v675_v32 }
 0x3de   :  { %1130 = shalt.err (!%p1127_p11)
}
 0x3df   :  { %s1131_s20 = scalar_lea.hbm %s1556_s6, 128 }
 0x3e0   :  { %p1132_p12 = scmp.ne.s32.totalorder %s1556_s6, %s1131_s20  ;;  %p1135_p13 = scmp.lt.u32.totalorder %s1131_s20, %s1556_s6 }
 0x3e2   :  { %p1137_p0 = pnand %p1135_p13, %p1132_p12 }
 0x3e4   :  { %1140 = shalt.err (!%p1137_p0)
}
 0x3e5   :  { %686 = dma.vmem_to_hbm [thread:$0]  %s684_s24, 128, %s1556_s6, [#allocation7]  }
 0x3e6   :  { %1145 = dma.done.wait [#allocation7], 128  }
 0x3e7   :  { %1146 = vsyncadd [#allocation7], 4294967168 }
 0x3e8   :  { %690 = vsyncpa [#allocation6], 1 }
 0x3e9   :  { %691 = vsyncpa [#allocation7], 1 }

</bundles_post_ra>
